<compile_context>
chip_gen: v5e
topology: v5e:2x2
jax: 0.10.0
libtpu: 0.0.40
codegen_flags: <defaults>
</compile_context>

<pallas_src>
import functools

import jax
import jax.numpy as jnp
import numpy as np
from jax.experimental import pallas as pl
from jax.experimental.pallas import tpu as pltpu


# ----------------------------------------------------------------------------
# Fused Pallas kernel (all LSTM layers + FC head in one invocation)
# ----------------------------------------------------------------------------
def make_fused_lstm_kernel(num_layers, T, B, H):
    """Returns a kernel with refs:
       x2d (T*B, I0),
       [wih_l (I_l, 4H), whh_l (H, 4H), b_l (1, 4H)] * num_layers,
       fc_w (1, H), fc_b (1, 1),
       out (B, 1),
       seq_scratch VMEM (T*B, H)
    Gate packing along the 4H axis is [i, f, o, g] (sigmoid gates contiguous).
    """

    def kernel(*refs):
        x_ref = refs[0]
        layer_refs = []
        idx = 1
        for _ in range(num_layers):
            layer_refs.append((refs[idx], refs[idx + 1], refs[idx + 2]))
            idx += 3
        fc_w_ref = refs[idx]
        fc_b_ref = refs[idx + 1]
        out_ref = refs[idx + 2]
        seq_ref = refs[idx + 3]          # VMEM scratch (T*B, H)

        h_last = None
        for layer, (wih_ref, whh_ref, b_ref) in enumerate(layer_refs):
            is_last = layer == num_layers - 1

            # ---- hoisted input projection: ONE big MXU matmul per layer ----
            seq_in = x_ref[...] if layer == 0 else seq_ref[...]      # (T*B, I_l)
            gx = (
                jnp.dot(seq_in, wih_ref[...],
                        preferred_element_type=jnp.float32)
                + b_ref[...]
            )                                                        # (T*B, 4H)

            whh = whh_ref[...]                                       # (H, 4H)
            h = jnp.zeros((B, H), jnp.float32)
            c = jnp.zeros((B, H), jnp.float32)

            # ---- serial recurrence: only h @ W_hh on the critical path ----
            # T is small & static -> fully unrolled with static slices.
            for t in range(T):
                gates = gx[t * B:(t + 1) * B, :] + jnp.dot(
                    h, whh, preferred_element_type=jnp.float32)      # (B, 4H)
                # [i, f, o, g]: one sigmoid over 3H lanes, one tanh over H
                sig = jax.nn.sigmoid(gates[:, 0:3 * H])
                i_g = sig[:, 0 * H:1 * H]
                f_g = sig[:, 1 * H:2 * H]
                o_g = sig[:, 2 * H:3 * H]
                g_g = jnp.tanh(gates[:, 3 * H:4 * H])
                c = f_g * c + i_g * g_g
                h = o_g * jnp.tanh(c)
                if not is_last:
                    # stash hidden state for the next layer's input projection
                    seq_ref[t * B:(t + 1) * B, :] = h
            h_last = h   # only t == T-1 of the LAST layer is consumed

        # ---- final Linear(H, 1): VPU multiply + lane reduce (no MXU pass) ----
        out_ref[...] = (
            jnp.sum(h_last * fc_w_ref[...], axis=-1, keepdims=True)
            + fc_b_ref[...]
        )

    return kernel


# ----------------------------------------------------------------------------
# Wrapper
# ----------------------------------------------------------------------------
@jax.jit
def lstm_model_forward(x, params):
    """Pallas equivalent of LSTMModel.forward.

    x: (B, T, input_size), batch_first like the PyTorch module.
    Returns: (B, 1).
    """
    B, T, I = x.shape
    layers = params["lstm_layers"]
    num_layers = len(layers)
    H = layers[0]["whh_t"].shape[0]

    # time-major, flattened to 2-D: row index = t*B + b
    x2d = jnp.transpose(x, (1, 0, 2)).reshape(T * B, I)

    inputs = [x2d]
    for layer in layers:
        inputs += [layer["wih_t"], layer["whh_t"], layer["bias"]]
    inputs += [params["fc_w"], params["fc_b"]]

    vmem = pl.BlockSpec(memory_space=pltpu.MemorySpace.VMEM)
    kernel = make_fused_lstm_kernel(num_layers, T, B, H)

    return pl.pallas_call(
        kernel,
        out_shape=jax.ShapeDtypeStruct((B, 1), jnp.float32),
        in_specs=[vmem] * len(inputs),
        out_specs=vmem,
        scratch_shapes=[pltpu.VMEM((T * B, H), jnp.float32)],
        compiler_params=pltpu.CompilerParams(
            vmem_limit_bytes=16 * 1024 * 1024,
        ),
    )(*inputs)


# ----------------------------------------------------------------------------
# Parameter init (PyTorch-style uniform(-1/sqrt(H), 1/sqrt(H)))
# ----------------------------------------------------------------------------
def _repack_ifog(w_or_b, H):
    """PyTorch packs gate rows as [i, f, g, o]; repack to [i, f, o, g]."""
    i = w_or_b[0 * H:1 * H]
    f = w_or_b[1 * H:2 * H]
    g = w_or_b[2 * H:3 * H]
    o = w_or_b[3 * H:4 * H]
    return jnp.concatenate([i, f, o, g], axis=0)


def init_params(key, input_size, hidden_size, num_layers):
    bound = 1.0 / np.sqrt(hidden_size)
    H = hidden_size
    layers = []
    raw_layers = []
    for layer in range(num_layers):
        in_sz = input_size if layer == 0 else hidden_size
        key, k1, k2, k3, k4 = jax.random.split(key, 5)
        w_ih = jax.random.uniform(k1, (4 * H, in_sz),
                                  minval=-bound, maxval=bound, dtype=jnp.float32)
        w_hh = jax.random.uniform(k2, (4 * H, H),
                                  minval=-bound, maxval=bound, dtype=jnp.float32)
        b_ih = jax.random.uniform(k3, (4 * H,),
                                  minval=-bound, maxval=bound, dtype=jnp.float32)
        b_hh = jax.random.uniform(k4, (4 * H,),
                                  minval=-bound, maxval=bound, dtype=jnp.float32)
        layers.append({
            "wih_t": _repack_ifog(w_ih, H).T,                          # (I, 4H)
            "whh_t": _repack_ifog(w_hh, H).T,                          # (H, 4H)
            "bias": _repack_ifog(b_ih + b_hh, H).reshape(1, 4 * H),    # (1, 4H)
        })
        raw_layers.append((w_ih, w_hh, b_ih, b_hh))

    key, k5, k6 = jax.random.split(key, 3)
    fc_w = jax.random.uniform(k5, (1, hidden_size),
                              minval=-bound, maxval=bound, dtype=jnp.float32)
    fc_b = jax.random.uniform(k6, (1,),
                              minval=-bound, maxval=bound, dtype=jnp.float32)

    params = {
        "lstm_layers": layers,
        "fc_w": fc_w,                      # (1, H), used as VPU broadcast factor
        "fc_b": fc_b.reshape(1, 1),
    }
    raw = {"layers": raw_layers, "fc_w": fc_w, "fc_b": fc_b}
    return params, raw


# ----------------------------------------------------------------------------
# Pure-JAX reference (mirrors PyTorch nn.LSTM math, original [i,f,g,o] packing)
# ----------------------------------------------------------------------------
def reference_forward(x, raw, hidden_size):
    B, T, _ = x.shape
    seq = x
    for (w_ih, w_hh, b_ih, b_hh) in raw["layers"]:
        H = hidden_size
        h = jnp.zeros((B, H), jnp.float32)
        c = jnp.zeros((B, H), jnp.float32)
        outs = []
        for t in range(T):
            g = seq[:, t] @ w_ih.T + h @ w_hh.T + b_ih + b_hh
            i_g = jax.nn.sigmoid(g[:, 0 * H:1 * H])
            f_g = jax.nn.sigmoid(g[:, 1 * H:2 * H])
            g_g = jnp.tanh(g[:, 2 * H:3 * H])
            o_g = jax.nn.sigmoid(g[:, 3 * H:4 * H])
            c = f_g * c + i_g * g_g
            h = o_g * jnp.tanh(c)
            outs.append(h)
        seq = jnp.stack(outs, axis=1)
    return seq[:, -1] @ raw["fc_w"].T + raw["fc_b"]


# ----------------------------------------------------------------------------
if __name__ == "__main__":
    batch = 2
    seq_len = 8
    input_size = 4
    hidden_size = 32
    num_layers = 2
    # dropout=0.0 semantics (eval mode)

    key = jax.random.PRNGKey(0)
    key, pkey, xkey = jax.random.split(key, 3)
    params, raw = init_params(pkey, input_size, hidden_size, num_layers)
    x = jax.random.normal(xkey, (batch, seq_len, input_size), dtype=jnp.float32)

    out = lstm_model_forward(x, params)
    out = jax.block_until_ready(out)

    ref = reference_forward(x, raw, hidden_size)
    np.testing.assert_allclose(np.asarray(out), np.asarray(ref),
                               rtol=1e-5, atol=1e-5)
    assert out.shape == (batch, 1)

    print("KERNEL_OK")
</pallas_src>

<mosaic_0001>
module attributes {stable_mosaic.version = 11 : i64} {
  func.func @kernel(%arg0: memref<16x4xf32, #tpu.memory_space<vmem>>, %arg1: memref<4x128xf32, #tpu.memory_space<vmem>>, %arg2: memref<32x128xf32, #tpu.memory_space<vmem>>, %arg3: memref<1x128xf32, #tpu.memory_space<vmem>>, %arg4: memref<32x128xf32, #tpu.memory_space<vmem>>, %arg5: memref<32x128xf32, #tpu.memory_space<vmem>>, %arg6: memref<1x128xf32, #tpu.memory_space<vmem>>, %arg7: memref<1x32xf32, #tpu.memory_space<vmem>>, %arg8: memref<1x1xf32, #tpu.memory_space<vmem>>, %arg9: memref<2x1xf32, #tpu.memory_space<vmem>>, %arg10: memref<16x32xf32, #tpu.memory_space<vmem>>) attributes {dimension_semantics = [], scalar_prefetch = 0 : i64, scratch_operands = 1 : i64, tpu.core_type = #tpu.core_type<tc>} {
    %c0 = arith.constant 0 : index
    %c0_0 = arith.constant 0 : index
    %0 = vector.load %arg0[%c0, %c0_0] : memref<16x4xf32, #tpu.memory_space<vmem>>, vector<16x4xf32>
    %c0_1 = arith.constant 0 : index
    %c0_2 = arith.constant 0 : index
    %1 = vector.load %arg1[%c0_1, %c0_2] : memref<4x128xf32, #tpu.memory_space<vmem>>, vector<4x128xf32>
    %cst = arith.constant dense<0.000000e+00> : vector<16x128xf32>
    %2 = tpu.matmul %0, %1, %cst {dimension_numbers = #tpu.dot_dimension_numbers<[1], [0], [0], [1], [0, 0, 1, 1], [], []>} : vector<16x4xf32>, vector<4x128xf32>, vector<16x128xf32> -> vector<16x128xf32>
    %c0_3 = arith.constant 0 : index
    %c0_4 = arith.constant 0 : index
    %3 = vector.load %arg3[%c0_3, %c0_4] : memref<1x128xf32, #tpu.memory_space<vmem>>, vector<1x128xf32>
    %4 = vector.broadcast %3 : vector<1x128xf32> to vector<16x128xf32>
    %5 = arith.addf %2, %4 : vector<16x128xf32>
    %c0_5 = arith.constant 0 : index
    %c0_6 = arith.constant 0 : index
    %6 = vector.load %arg2[%c0_5, %c0_6] : memref<32x128xf32, #tpu.memory_space<vmem>>, vector<32x128xf32>
    %cst_7 = arith.constant 0.000000e+00 : f32
    %7 = vector.broadcast %cst_7 : f32 to vector<2x32xf32>
    %cst_8 = arith.constant 0.000000e+00 : f32
    %8 = vector.broadcast %cst_8 : f32 to vector<2x32xf32>
    %9 = vector.extract_strided_slice %5 {offsets = [0, 0], sizes = [2, 128], strides = [1, 1]} : vector<16x128xf32> to vector<2x128xf32>
    %cst_9 = arith.constant dense<0.000000e+00> : vector<2x128xf32>
    %10 = tpu.matmul %7, %6, %cst_9 {dimension_numbers = #tpu.dot_dimension_numbers<[1], [0], [0], [1], [0, 0, 1, 1], [], []>} : vector<2x32xf32>, vector<32x128xf32>, vector<2x128xf32> -> vector<2x128xf32>
    %11 = arith.addf %9, %10 : vector<2x128xf32>
    %12 = vector.extract_strided_slice %11 {offsets = [0, 0], sizes = [2, 96], strides = [1, 1]} : vector<2x128xf32> to vector<2x96xf32>
    %13 = arith.negf %12 : vector<2x96xf32>
    %14 = math.exp %13 : vector<2x96xf32>
    %cst_10 = arith.constant 1.000000e+00 : f32
    %15 = vector.broadcast %cst_10 : f32 to vector<2x96xf32>
    %16 = arith.addf %15, %14 : vector<2x96xf32>
    %17 = arith.divf %15, %16 : vector<2x96xf32>
    %18 = vector.extract_strided_slice %17 {offsets = [0, 0], sizes = [2, 32], strides = [1, 1]} : vector<2x96xf32> to vector<2x32xf32>
    %19 = vector.extract_strided_slice %17 {offsets = [0, 32], sizes = [2, 32], strides = [1, 1]} : vector<2x96xf32> to vector<2x32xf32>
    %20 = vector.extract_strided_slice %17 {offsets = [0, 64], sizes = [2, 32], strides = [1, 1]} : vector<2x96xf32> to vector<2x32xf32>
    %21 = vector.extract_strided_slice %11 {offsets = [0, 96], sizes = [2, 32], strides = [1, 1]} : vector<2x128xf32> to vector<2x32xf32>
    %22 = math.tanh %21 : vector<2x32xf32>
    %23 = arith.mulf %19, %8 : vector<2x32xf32>
    %24 = arith.mulf %18, %22 : vector<2x32xf32>
    %25 = arith.addf %23, %24 : vector<2x32xf32>
    %26 = math.tanh %25 : vector<2x32xf32>
    %27 = arith.mulf %20, %26 : vector<2x32xf32>
    %c0_11 = arith.constant 0 : index
    %c0_12 = arith.constant 0 : index
    %28 = vector.load %arg10[%c0_11, %c0_12] : memref<16x32xf32, #tpu.memory_space<vmem>>, vector<2x32xf32>
    tpu.vector_store %arg10[%c0_11, %c0_12], %27 {strides = array<i32>} : memref<16x32xf32, #tpu.memory_space<vmem>>, vector<2x32xf32>,
    %29 = vector.extract_strided_slice %5 {offsets = [2, 0], sizes = [2, 128], strides = [1, 1]} : vector<16x128xf32> to vector<2x128xf32>
    %cst_13 = arith.constant dense<0.000000e+00> : vector<2x128xf32>
    %30 = tpu.matmul %27, %6, %cst_13 {dimension_numbers = #tpu.dot_dimension_numbers<[1], [0], [0], [1], [0, 0, 1, 1], [], []>} : vector<2x32xf32>, vector<32x128xf32>, vector<2x128xf32> -> vector<2x128xf32>
    %31 = arith.addf %29, %30 : vector<2x128xf32>
    %32 = vector.extract_strided_slice %31 {offsets = [0, 0], sizes = [2, 96], strides = [1, 1]} : vector<2x128xf32> to vector<2x96xf32>
    %33 = arith.negf %32 : vector<2x96xf32>
    %34 = math.exp %33 : vector<2x96xf32>
    %cst_14 = arith.constant 1.000000e+00 : f32
    %35 = vector.broadcast %cst_14 : f32 to vector<2x96xf32>
    %36 = arith.addf %35, %34 : vector<2x96xf32>
    %37 = arith.divf %35, %36 : vector<2x96xf32>
    %38 = vector.extract_strided_slice %37 {offsets = [0, 0], sizes = [2, 32], strides = [1, 1]} : vector<2x96xf32> to vector<2x32xf32>
    %39 = vector.extract_strided_slice %37 {offsets = [0, 32], sizes = [2, 32], strides = [1, 1]} : vector<2x96xf32> to vector<2x32xf32>
    %40 = vector.extract_strided_slice %37 {offsets = [0, 64], sizes = [2, 32], strides = [1, 1]} : vector<2x96xf32> to vector<2x32xf32>
    %41 = vector.extract_strided_slice %31 {offsets = [0, 96], sizes = [2, 32], strides = [1, 1]} : vector<2x128xf32> to vector<2x32xf32>
    %42 = math.tanh %41 : vector<2x32xf32>
    %43 = arith.mulf %39, %25 : vector<2x32xf32>
    %44 = arith.mulf %38, %42 : vector<2x32xf32>
    %45 = arith.addf %43, %44 : vector<2x32xf32>
    %46 = math.tanh %45 : vector<2x32xf32>
    %47 = arith.mulf %40, %46 : vector<2x32xf32>
    %c2 = arith.constant 2 : index
    %c0_15 = arith.constant 0 : index
    %48 = vector.load %arg10[%c2, %c0_15] : memref<16x32xf32, #tpu.memory_space<vmem>>, vector<2x32xf32>
    tpu.vector_store %arg10[%c2, %c0_15], %47 {strides = array<i32>} : memref<16x32xf32, #tpu.memory_space<vmem>>, vector<2x32xf32>,
    %49 = vector.extract_strided_slice %5 {offsets = [4, 0], sizes = [2, 128], strides = [1, 1]} : vector<16x128xf32> to vector<2x128xf32>
    %cst_16 = arith.constant dense<0.000000e+00> : vector<2x128xf32>
    %50 = tpu.matmul %47, %6, %cst_16 {dimension_numbers = #tpu.dot_dimension_numbers<[1], [0], [0], [1], [0, 0, 1, 1], [], []>} : vector<2x32xf32>, vector<32x128xf32>, vector<2x128xf32> -> vector<2x128xf32>
    %51 = arith.addf %49, %50 : vector<2x128xf32>
    %52 = vector.extract_strided_slice %51 {offsets = [0, 0], sizes = [2, 96], strides = [1, 1]} : vector<2x128xf32> to vector<2x96xf32>
    %53 = arith.negf %52 : vector<2x96xf32>
    %54 = math.exp %53 : vector<2x96xf32>
    %cst_17 = arith.constant 1.000000e+00 : f32
    %55 = vector.broadcast %cst_17 : f32 to vector<2x96xf32>
    %56 = arith.addf %55, %54 : vector<2x96xf32>
    %57 = arith.divf %55, %56 : vector<2x96xf32>
    %58 = vector.extract_strided_slice %57 {offsets = [0, 0], sizes = [2, 32], strides = [1, 1]} : vector<2x96xf32> to vector<2x32xf32>
    %59 = vector.extract_strided_slice %57 {offsets = [0, 32], sizes = [2, 32], strides = [1, 1]} : vector<2x96xf32> to vector<2x32xf32>
    %60 = vector.extract_strided_slice %57 {offsets = [0, 64], sizes = [2, 32], strides = [1, 1]} : vector<2x96xf32> to vector<2x32xf32>
    %61 = vector.extract_strided_slice %51 {offsets = [0, 96], sizes = [2, 32], strides = [1, 1]} : vector<2x128xf32> to vector<2x32xf32>
    %62 = math.tanh %61 : vector<2x32xf32>
    %63 = arith.mulf %59, %45 : vector<2x32xf32>
    %64 = arith.mulf %58, %62 : vector<2x32xf32>
    %65 = arith.addf %63, %64 : vector<2x32xf32>
    %66 = math.tanh %65 : vector<2x32xf32>
    %67 = arith.mulf %60, %66 : vector<2x32xf32>
    %c4 = arith.constant 4 : index
    %c0_18 = arith.constant 0 : index
    %68 = vector.load %arg10[%c4, %c0_18] : memref<16x32xf32, #tpu.memory_space<vmem>>, vector<2x32xf32>
    tpu.vector_store %arg10[%c4, %c0_18], %67 {strides = array<i32>} : memref<16x32xf32, #tpu.memory_space<vmem>>, vector<2x32xf32>,
    %69 = vector.extract_strided_slice %5 {offsets = [6, 0], sizes = [2, 128], strides = [1, 1]} : vector<16x128xf32> to vector<2x128xf32>
    %cst_19 = arith.constant dense<0.000000e+00> : vector<2x128xf32>
    %70 = tpu.matmul %67, %6, %cst_19 {dimension_numbers = #tpu.dot_dimension_numbers<[1], [0], [0], [1], [0, 0, 1, 1], [], []>} : vector<2x32xf32>, vector<32x128xf32>, vector<2x128xf32> -> vector<2x128xf32>
    %71 = arith.addf %69, %70 : vector<2x128xf32>
    %72 = vector.extract_strided_slice %71 {offsets = [0, 0], sizes = [2, 96], strides = [1, 1]} : vector<2x128xf32> to vector<2x96xf32>
    %73 = arith.negf %72 : vector<2x96xf32>
    %74 = math.exp %73 : vector<2x96xf32>
    %cst_20 = arith.constant 1.000000e+00 : f32
    %75 = vector.broadcast %cst_20 : f32 to vector<2x96xf32>
    %76 = arith.addf %75, %74 : vector<2x96xf32>
    %77 = arith.divf %75, %76 : vector<2x96xf32>
    %78 = vector.extract_strided_slice %77 {offsets = [0, 0], sizes = [2, 32], strides = [1, 1]} : vector<2x96xf32> to vector<2x32xf32>
    %79 = vector.extract_strided_slice %77 {offsets = [0, 32], sizes = [2, 32], strides = [1, 1]} : vector<2x96xf32> to vector<2x32xf32>
    %80 = vector.extract_strided_slice %77 {offsets = [0, 64], sizes = [2, 32], strides = [1, 1]} : vector<2x96xf32> to vector<2x32xf32>
    %81 = vector.extract_strided_slice %71 {offsets = [0, 96], sizes = [2, 32], strides = [1, 1]} : vector<2x128xf32> to vector<2x32xf32>
    %82 = math.tanh %81 : vector<2x32xf32>
    %83 = arith.mulf %79, %65 : vector<2x32xf32>
    %84 = arith.mulf %78, %82 : vector<2x32xf32>
    %85 = arith.addf %83, %84 : vector<2x32xf32>
    %86 = math.tanh %85 : vector<2x32xf32>
    %87 = arith.mulf %80, %86 : vector<2x32xf32>
    %c6 = arith.constant 6 : index
    %c0_21 = arith.constant 0 : index
    %88 = vector.load %arg10[%c6, %c0_21] : memref<16x32xf32, #tpu.memory_space<vmem>>, vector<2x32xf32>
    tpu.vector_store %arg10[%c6, %c0_21], %87 {strides = array<i32>} : memref<16x32xf32, #tpu.memory_space<vmem>>, vector<2x32xf32>,
    %89 = vector.extract_strided_slice %5 {offsets = [8, 0], sizes = [2, 128], strides = [1, 1]} : vector<16x128xf32> to vector<2x128xf32>
    %cst_22 = arith.constant dense<0.000000e+00> : vector<2x128xf32>
    %90 = tpu.matmul %87, %6, %cst_22 {dimension_numbers = #tpu.dot_dimension_numbers<[1], [0], [0], [1], [0, 0, 1, 1], [], []>} : vector<2x32xf32>, vector<32x128xf32>, vector<2x128xf32> -> vector<2x128xf32>
    %91 = arith.addf %89, %90 : vector<2x128xf32>
    %92 = vector.extract_strided_slice %91 {offsets = [0, 0], sizes = [2, 96], strides = [1, 1]} : vector<2x128xf32> to vector<2x96xf32>
    %93 = arith.negf %92 : vector<2x96xf32>
    %94 = math.exp %93 : vector<2x96xf32>
    %cst_23 = arith.constant 1.000000e+00 : f32
    %95 = vector.broadcast %cst_23 : f32 to vector<2x96xf32>
    %96 = arith.addf %95, %94 : vector<2x96xf32>
    %97 = arith.divf %95, %96 : vector<2x96xf32>
    %98 = vector.extract_strided_slice %97 {offsets = [0, 0], sizes = [2, 32], strides = [1, 1]} : vector<2x96xf32> to vector<2x32xf32>
    %99 = vector.extract_strided_slice %97 {offsets = [0, 32], sizes = [2, 32], strides = [1, 1]} : vector<2x96xf32> to vector<2x32xf32>
    %100 = vector.extract_strided_slice %97 {offsets = [0, 64], sizes = [2, 32], strides = [1, 1]} : vector<2x96xf32> to vector<2x32xf32>
    %101 = vector.extract_strided_slice %91 {offsets = [0, 96], sizes = [2, 32], strides = [1, 1]} : vector<2x128xf32> to vector<2x32xf32>
    %102 = math.tanh %101 : vector<2x32xf32>
    %103 = arith.mulf %99, %85 : vector<2x32xf32>
    %104 = arith.mulf %98, %102 : vector<2x32xf32>
    %105 = arith.addf %103, %104 : vector<2x32xf32>
    %106 = math.tanh %105 : vector<2x32xf32>
    %107 = arith.mulf %100, %106 : vector<2x32xf32>
    %c8 = arith.constant 8 : index
    %c0_24 = arith.constant 0 : index
    %108 = vector.load %arg10[%c8, %c0_24] : memref<16x32xf32, #tpu.memory_space<vmem>>, vector<2x32xf32>
    tpu.vector_store %arg10[%c8, %c0_24], %107 {strides = array<i32>} : memref<16x32xf32, #tpu.memory_space<vmem>>, vector<2x32xf32>,
    %109 = vector.extract_strided_slice %5 {offsets = [10, 0], sizes = [2, 128], strides = [1, 1]} : vector<16x128xf32> to vector<2x128xf32>
    %cst_25 = arith.constant dense<0.000000e+00> : vector<2x128xf32>
    %110 = tpu.matmul %107, %6, %cst_25 {dimension_numbers = #tpu.dot_dimension_numbers<[1], [0], [0], [1], [0, 0, 1, 1], [], []>} : vector<2x32xf32>, vector<32x128xf32>, vector<2x128xf32> -> vector<2x128xf32>
    %111 = arith.addf %109, %110 : vector<2x128xf32>
    %112 = vector.extract_strided_slice %111 {offsets = [0, 0], sizes = [2, 96], strides = [1, 1]} : vector<2x128xf32> to vector<2x96xf32>
    %113 = arith.negf %112 : vector<2x96xf32>
    %114 = math.exp %113 : vector<2x96xf32>
    %cst_26 = arith.constant 1.000000e+00 : f32
    %115 = vector.broadcast %cst_26 : f32 to vector<2x96xf32>
    %116 = arith.addf %115, %114 : vector<2x96xf32>
    %117 = arith.divf %115, %116 : vector<2x96xf32>
    %118 = vector.extract_strided_slice %117 {offsets = [0, 0], sizes = [2, 32], strides = [1, 1]} : vector<2x96xf32> to vector<2x32xf32>
    %119 = vector.extract_strided_slice %117 {offsets = [0, 32], sizes = [2, 32], strides = [1, 1]} : vector<2x96xf32> to vector<2x32xf32>
    %120 = vector.extract_strided_slice %117 {offsets = [0, 64], sizes = [2, 32], strides = [1, 1]} : vector<2x96xf32> to vector<2x32xf32>
    %121 = vector.extract_strided_slice %111 {offsets = [0, 96], sizes = [2, 32], strides = [1, 1]} : vector<2x128xf32> to vector<2x32xf32>
    %122 = math.tanh %121 : vector<2x32xf32>
    %123 = arith.mulf %119, %105 : vector<2x32xf32>
    %124 = arith.mulf %118, %122 : vector<2x32xf32>
    %125 = arith.addf %123, %124 : vector<2x32xf32>
    %126 = math.tanh %125 : vector<2x32xf32>
    %127 = arith.mulf %120, %126 : vector<2x32xf32>
    %c10 = arith.constant 10 : index
    %c0_27 = arith.constant 0 : index
    %128 = vector.load %arg10[%c10, %c0_27] : memref<16x32xf32, #tpu.memory_space<vmem>>, vector<2x32xf32>
    tpu.vector_store %arg10[%c10, %c0_27], %127 {strides = array<i32>} : memref<16x32xf32, #tpu.memory_space<vmem>>, vector<2x32xf32>,
    %129 = vector.extract_strided_slice %5 {offsets = [12, 0], sizes = [2, 128], strides = [1, 1]} : vector<16x128xf32> to vector<2x128xf32>
    %cst_28 = arith.constant dense<0.000000e+00> : vector<2x128xf32>
    %130 = tpu.matmul %127, %6, %cst_28 {dimension_numbers = #tpu.dot_dimension_numbers<[1], [0], [0], [1], [0, 0, 1, 1], [], []>} : vector<2x32xf32>, vector<32x128xf32>, vector<2x128xf32> -> vector<2x128xf32>
    %131 = arith.addf %129, %130 : vector<2x128xf32>
    %132 = vector.extract_strided_slice %131 {offsets = [0, 0], sizes = [2, 96], strides = [1, 1]} : vector<2x128xf32> to vector<2x96xf32>
    %133 = arith.negf %132 : vector<2x96xf32>
    %134 = math.exp %133 : vector<2x96xf32>
    %cst_29 = arith.constant 1.000000e+00 : f32
    %135 = vector.broadcast %cst_29 : f32 to vector<2x96xf32>
    %136 = arith.addf %135, %134 : vector<2x96xf32>
    %137 = arith.divf %135, %136 : vector<2x96xf32>
    %138 = vector.extract_strided_slice %137 {offsets = [0, 0], sizes = [2, 32], strides = [1, 1]} : vector<2x96xf32> to vector<2x32xf32>
    %139 = vector.extract_strided_slice %137 {offsets = [0, 32], sizes = [2, 32], strides = [1, 1]} : vector<2x96xf32> to vector<2x32xf32>
    %140 = vector.extract_strided_slice %137 {offsets = [0, 64], sizes = [2, 32], strides = [1, 1]} : vector<2x96xf32> to vector<2x32xf32>
    %141 = vector.extract_strided_slice %131 {offsets = [0, 96], sizes = [2, 32], strides = [1, 1]} : vector<2x128xf32> to vector<2x32xf32>
    %142 = math.tanh %141 : vector<2x32xf32>
    %143 = arith.mulf %139, %125 : vector<2x32xf32>
    %144 = arith.mulf %138, %142 : vector<2x32xf32>
    %145 = arith.addf %143, %144 : vector<2x32xf32>
    %146 = math.tanh %145 : vector<2x32xf32>
    %147 = arith.mulf %140, %146 : vector<2x32xf32>
    %c12 = arith.constant 12 : index
    %c0_30 = arith.constant 0 : index
    %148 = vector.load %arg10[%c12, %c0_30] : memref<16x32xf32, #tpu.memory_space<vmem>>, vector<2x32xf32>
    tpu.vector_store %arg10[%c12, %c0_30], %147 {strides = array<i32>} : memref<16x32xf32, #tpu.memory_space<vmem>>, vector<2x32xf32>,
    %149 = vector.extract_strided_slice %5 {offsets = [14, 0], sizes = [2, 128], strides = [1, 1]} : vector<16x128xf32> to vector<2x128xf32>
    %cst_31 = arith.constant dense<0.000000e+00> : vector<2x128xf32>
    %150 = tpu.matmul %147, %6, %cst_31 {dimension_numbers = #tpu.dot_dimension_numbers<[1], [0], [0], [1], [0, 0, 1, 1], [], []>} : vector<2x32xf32>, vector<32x128xf32>, vector<2x128xf32> -> vector<2x128xf32>
    %151 = arith.addf %149, %150 : vector<2x128xf32>
    %152 = vector.extract_strided_slice %151 {offsets = [0, 0], sizes = [2, 96], strides = [1, 1]} : vector<2x128xf32> to vector<2x96xf32>
    %153 = arith.negf %152 : vector<2x96xf32>
    %154 = math.exp %153 : vector<2x96xf32>
    %cst_32 = arith.constant 1.000000e+00 : f32
    %155 = vector.broadcast %cst_32 : f32 to vector<2x96xf32>
    %156 = arith.addf %155, %154 : vector<2x96xf32>
    %157 = arith.divf %155, %156 : vector<2x96xf32>
    %158 = vector.extract_strided_slice %157 {offsets = [0, 0], sizes = [2, 32], strides = [1, 1]} : vector<2x96xf32> to vector<2x32xf32>
    %159 = vector.extract_strided_slice %157 {offsets = [0, 32], sizes = [2, 32], strides = [1, 1]} : vector<2x96xf32> to vector<2x32xf32>
    %160 = vector.extract_strided_slice %157 {offsets = [0, 64], sizes = [2, 32], strides = [1, 1]} : vector<2x96xf32> to vector<2x32xf32>
    %161 = vector.extract_strided_slice %151 {offsets = [0, 96], sizes = [2, 32], strides = [1, 1]} : vector<2x128xf32> to vector<2x32xf32>
    %162 = math.tanh %161 : vector<2x32xf32>
    %163 = arith.mulf %159, %145 : vector<2x32xf32>
    %164 = arith.mulf %158, %162 : vector<2x32xf32>
    %165 = arith.addf %163, %164 : vector<2x32xf32>
    %166 = math.tanh %165 : vector<2x32xf32>
    %167 = arith.mulf %160, %166 : vector<2x32xf32>
    %c14 = arith.constant 14 : index
    %c0_33 = arith.constant 0 : index
    %168 = vector.load %arg10[%c14, %c0_33] : memref<16x32xf32, #tpu.memory_space<vmem>>, vector<2x32xf32>
    tpu.vector_store %arg10[%c14, %c0_33], %167 {strides = array<i32>} : memref<16x32xf32, #tpu.memory_space<vmem>>, vector<2x32xf32>,
    %c0_34 = arith.constant 0 : index
    %c0_35 = arith.constant 0 : index
    %169 = vector.load %arg10[%c0_34, %c0_35] : memref<16x32xf32, #tpu.memory_space<vmem>>, vector<16x32xf32>
    %c0_36 = arith.constant 0 : index
    %c0_37 = arith.constant 0 : index
    %170 = vector.load %arg4[%c0_36, %c0_37] : memref<32x128xf32, #tpu.memory_space<vmem>>, vector<32x128xf32>
    %cst_38 = arith.constant dense<0.000000e+00> : vector<16x128xf32>
    %171 = tpu.matmul %169, %170, %cst_38 {dimension_numbers = #tpu.dot_dimension_numbers<[1], [0], [0], [1], [0, 0, 1, 1], [], []>} : vector<16x32xf32>, vector<32x128xf32>, vector<16x128xf32> -> vector<16x128xf32>
    %c0_39 = arith.constant 0 : index
    %c0_40 = arith.constant 0 : index
    %172 = vector.load %arg6[%c0_39, %c0_40] : memref<1x128xf32, #tpu.memory_space<vmem>>, vector<1x128xf32>
    %173 = vector.broadcast %172 : vector<1x128xf32> to vector<16x128xf32>
    %174 = arith.addf %171, %173 : vector<16x128xf32>
    %c0_41 = arith.constant 0 : index
    %c0_42 = arith.constant 0 : index
    %175 = vector.load %arg5[%c0_41, %c0_42] : memref<32x128xf32, #tpu.memory_space<vmem>>, vector<32x128xf32>
    %cst_43 = arith.constant 0.000000e+00 : f32
    %176 = vector.broadcast %cst_43 : f32 to vector<2x32xf32>
    %cst_44 = arith.constant 0.000000e+00 : f32
    %177 = vector.broadcast %cst_44 : f32 to vector<2x32xf32>
    %178 = vector.extract_strided_slice %174 {offsets = [0, 0], sizes = [2, 128], strides = [1, 1]} : vector<16x128xf32> to vector<2x128xf32>
    %cst_45 = arith.constant dense<0.000000e+00> : vector<2x128xf32>
    %179 = tpu.matmul %176, %175, %cst_45 {dimension_numbers = #tpu.dot_dimension_numbers<[1], [0], [0], [1], [0, 0, 1, 1], [], []>} : vector<2x32xf32>, vector<32x128xf32>, vector<2x128xf32> -> vector<2x128xf32>
    %180 = arith.addf %178, %179 : vector<2x128xf32>
    %181 = vector.extract_strided_slice %180 {offsets = [0, 0], sizes = [2, 96], strides = [1, 1]} : vector<2x128xf32> to vector<2x96xf32>
    %182 = arith.negf %181 : vector<2x96xf32>
    %183 = math.exp %182 : vector<2x96xf32>
    %cst_46 = arith.constant 1.000000e+00 : f32
    %184 = vector.broadcast %cst_46 : f32 to vector<2x96xf32>
    %185 = arith.addf %184, %183 : vector<2x96xf32>
    %186 = arith.divf %184, %185 : vector<2x96xf32>
    %187 = vector.extract_strided_slice %186 {offsets = [0, 0], sizes = [2, 32], strides = [1, 1]} : vector<2x96xf32> to vector<2x32xf32>
    %188 = vector.extract_strided_slice %186 {offsets = [0, 32], sizes = [2, 32], strides = [1, 1]} : vector<2x96xf32> to vector<2x32xf32>
    %189 = vector.extract_strided_slice %186 {offsets = [0, 64], sizes = [2, 32], strides = [1, 1]} : vector<2x96xf32> to vector<2x32xf32>
    %190 = vector.extract_strided_slice %180 {offsets = [0, 96], sizes = [2, 32], strides = [1, 1]} : vector<2x128xf32> to vector<2x32xf32>
    %191 = math.tanh %190 : vector<2x32xf32>
    %192 = arith.mulf %188, %177 : vector<2x32xf32>
    %193 = arith.mulf %187, %191 : vector<2x32xf32>
    %194 = arith.addf %192, %193 : vector<2x32xf32>
    %195 = math.tanh %194 : vector<2x32xf32>
    %196 = arith.mulf %189, %195 : vector<2x32xf32>
    %197 = vector.extract_strided_slice %174 {offsets = [2, 0], sizes = [2, 128], strides = [1, 1]} : vector<16x128xf32> to vector<2x128xf32>
    %cst_47 = arith.constant dense<0.000000e+00> : vector<2x128xf32>
    %198 = tpu.matmul %196, %175, %cst_47 {dimension_numbers = #tpu.dot_dimension_numbers<[1], [0], [0], [1], [0, 0, 1, 1], [], []>} : vector<2x32xf32>, vector<32x128xf32>, vector<2x128xf32> -> vector<2x128xf32>
    %199 = arith.addf %197, %198 : vector<2x128xf32>
    %200 = vector.extract_strided_slice %199 {offsets = [0, 0], sizes = [2, 96], strides = [1, 1]} : vector<2x128xf32> to vector<2x96xf32>
    %201 = arith.negf %200 : vector<2x96xf32>
    %202 = math.exp %201 : vector<2x96xf32>
    %cst_48 = arith.constant 1.000000e+00 : f32
    %203 = vector.broadcast %cst_48 : f32 to vector<2x96xf32>
    %204 = arith.addf %203, %202 : vector<2x96xf32>
    %205 = arith.divf %203, %204 : vector<2x96xf32>
    %206 = vector.extract_strided_slice %205 {offsets = [0, 0], sizes = [2, 32], strides = [1, 1]} : vector<2x96xf32> to vector<2x32xf32>
    %207 = vector.extract_strided_slice %205 {offsets = [0, 32], sizes = [2, 32], strides = [1, 1]} : vector<2x96xf32> to vector<2x32xf32>
    %208 = vector.extract_strided_slice %205 {offsets = [0, 64], sizes = [2, 32], strides = [1, 1]} : vector<2x96xf32> to vector<2x32xf32>
    %209 = vector.extract_strided_slice %199 {offsets = [0, 96], sizes = [2, 32], strides = [1, 1]} : vector<2x128xf32> to vector<2x32xf32>
    %210 = math.tanh %209 : vector<2x32xf32>
    %211 = arith.mulf %207, %194 : vector<2x32xf32>
    %212 = arith.mulf %206, %210 : vector<2x32xf32>
    %213 = arith.addf %211, %212 : vector<2x32xf32>
    %214 = math.tanh %213 : vector<2x32xf32>
    %215 = arith.mulf %208, %214 : vector<2x32xf32>
    %216 = vector.extract_strided_slice %174 {offsets = [4, 0], sizes = [2, 128], strides = [1, 1]} : vector<16x128xf32> to vector<2x128xf32>
    %cst_49 = arith.constant dense<0.000000e+00> : vector<2x128xf32>
    %217 = tpu.matmul %215, %175, %cst_49 {dimension_numbers = #tpu.dot_dimension_numbers<[1], [0], [0], [1], [0, 0, 1, 1], [], []>} : vector<2x32xf32>, vector<32x128xf32>, vector<2x128xf32> -> vector<2x128xf32>
    %218 = arith.addf %216, %217 : vector<2x128xf32>
    %219 = vector.extract_strided_slice %218 {offsets = [0, 0], sizes = [2, 96], strides = [1, 1]} : vector<2x128xf32> to vector<2x96xf32>
    %220 = arith.negf %219 : vector<2x96xf32>
    %221 = math.exp %220 : vector<2x96xf32>
    %cst_50 = arith.constant 1.000000e+00 : f32
    %222 = vector.broadcast %cst_50 : f32 to vector<2x96xf32>
    %223 = arith.addf %222, %221 : vector<2x96xf32>
    %224 = arith.divf %222, %223 : vector<2x96xf32>
    %225 = vector.extract_strided_slice %224 {offsets = [0, 0], sizes = [2, 32], strides = [1, 1]} : vector<2x96xf32> to vector<2x32xf32>
    %226 = vector.extract_strided_slice %224 {offsets = [0, 32], sizes = [2, 32], strides = [1, 1]} : vector<2x96xf32> to vector<2x32xf32>
    %227 = vector.extract_strided_slice %224 {offsets = [0, 64], sizes = [2, 32], strides = [1, 1]} : vector<2x96xf32> to vector<2x32xf32>
    %228 = vector.extract_strided_slice %218 {offsets = [0, 96], sizes = [2, 32], strides = [1, 1]} : vector<2x128xf32> to vector<2x32xf32>
    %229 = math.tanh %228 : vector<2x32xf32>
    %230 = arith.mulf %226, %213 : vector<2x32xf32>
    %231 = arith.mulf %225, %229 : vector<2x32xf32>
    %232 = arith.addf %230, %231 : vector<2x32xf32>
    %233 = math.tanh %232 : vector<2x32xf32>
    %234 = arith.mulf %227, %233 : vector<2x32xf32>
    %235 = vector.extract_strided_slice %174 {offsets = [6, 0], sizes = [2, 128], strides = [1, 1]} : vector<16x128xf32> to vector<2x128xf32>
    %cst_51 = arith.constant dense<0.000000e+00> : vector<2x128xf32>
    %236 = tpu.matmul %234, %175, %cst_51 {dimension_numbers = #tpu.dot_dimension_numbers<[1], [0], [0], [1], [0, 0, 1, 1], [], []>} : vector<2x32xf32>, vector<32x128xf32>, vector<2x128xf32> -> vector<2x128xf32>
    %237 = arith.addf %235, %236 : vector<2x128xf32>
    %238 = vector.extract_strided_slice %237 {offsets = [0, 0], sizes = [2, 96], strides = [1, 1]} : vector<2x128xf32> to vector<2x96xf32>
    %239 = arith.negf %238 : vector<2x96xf32>
    %240 = math.exp %239 : vector<2x96xf32>
    %cst_52 = arith.constant 1.000000e+00 : f32
    %241 = vector.broadcast %cst_52 : f32 to vector<2x96xf32>
    %242 = arith.addf %241, %240 : vector<2x96xf32>
    %243 = arith.divf %241, %242 : vector<2x96xf32>
    %244 = vector.extract_strided_slice %243 {offsets = [0, 0], sizes = [2, 32], strides = [1, 1]} : vector<2x96xf32> to vector<2x32xf32>
    %245 = vector.extract_strided_slice %243 {offsets = [0, 32], sizes = [2, 32], strides = [1, 1]} : vector<2x96xf32> to vector<2x32xf32>
    %246 = vector.extract_strided_slice %243 {offsets = [0, 64], sizes = [2, 32], strides = [1, 1]} : vector<2x96xf32> to vector<2x32xf32>
    %247 = vector.extract_strided_slice %237 {offsets = [0, 96], sizes = [2, 32], strides = [1, 1]} : vector<2x128xf32> to vector<2x32xf32>
    %248 = math.tanh %247 : vector<2x32xf32>
    %249 = arith.mulf %245, %232 : vector<2x32xf32>
    %250 = arith.mulf %244, %248 : vector<2x32xf32>
    %251 = arith.addf %249, %250 : vector<2x32xf32>
    %252 = math.tanh %251 : vector<2x32xf32>
    %253 = arith.mulf %246, %252 : vector<2x32xf32>
    %254 = vector.extract_strided_slice %174 {offsets = [8, 0], sizes = [2, 128], strides = [1, 1]} : vector<16x128xf32> to vector<2x128xf32>
    %cst_53 = arith.constant dense<0.000000e+00> : vector<2x128xf32>
    %255 = tpu.matmul %253, %175, %cst_53 {dimension_numbers = #tpu.dot_dimension_numbers<[1], [0], [0], [1], [0, 0, 1, 1], [], []>} : vector<2x32xf32>, vector<32x128xf32>, vector<2x128xf32> -> vector<2x128xf32>
    %256 = arith.addf %254, %255 : vector<2x128xf32>
    %257 = vector.extract_strided_slice %256 {offsets = [0, 0], sizes = [2, 96], strides = [1, 1]} : vector<2x128xf32> to vector<2x96xf32>
    %258 = arith.negf %257 : vector<2x96xf32>
    %259 = math.exp %258 : vector<2x96xf32>
    %cst_54 = arith.constant 1.000000e+00 : f32
    %260 = vector.broadcast %cst_54 : f32 to vector<2x96xf32>
    %261 = arith.addf %260, %259 : vector<2x96xf32>
    %262 = arith.divf %260, %261 : vector<2x96xf32>
    %263 = vector.extract_strided_slice %262 {offsets = [0, 0], sizes = [2, 32], strides = [1, 1]} : vector<2x96xf32> to vector<2x32xf32>
    %264 = vector.extract_strided_slice %262 {offsets = [0, 32], sizes = [2, 32], strides = [1, 1]} : vector<2x96xf32> to vector<2x32xf32>
    %265 = vector.extract_strided_slice %262 {offsets = [0, 64], sizes = [2, 32], strides = [1, 1]} : vector<2x96xf32> to vector<2x32xf32>
    %266 = vector.extract_strided_slice %256 {offsets = [0, 96], sizes = [2, 32], strides = [1, 1]} : vector<2x128xf32> to vector<2x32xf32>
    %267 = math.tanh %266 : vector<2x32xf32>
    %268 = arith.mulf %264, %251 : vector<2x32xf32>
    %269 = arith.mulf %263, %267 : vector<2x32xf32>
    %270 = arith.addf %268, %269 : vector<2x32xf32>
    %271 = math.tanh %270 : vector<2x32xf32>
    %272 = arith.mulf %265, %271 : vector<2x32xf32>
    %273 = vector.extract_strided_slice %174 {offsets = [10, 0], sizes = [2, 128], strides = [1, 1]} : vector<16x128xf32> to vector<2x128xf32>
    %cst_55 = arith.constant dense<0.000000e+00> : vector<2x128xf32>
    %274 = tpu.matmul %272, %175, %cst_55 {dimension_numbers = #tpu.dot_dimension_numbers<[1], [0], [0], [1], [0, 0, 1, 1], [], []>} : vector<2x32xf32>, vector<32x128xf32>, vector<2x128xf32> -> vector<2x128xf32>
    %275 = arith.addf %273, %274 : vector<2x128xf32>
    %276 = vector.extract_strided_slice %275 {offsets = [0, 0], sizes = [2, 96], strides = [1, 1]} : vector<2x128xf32> to vector<2x96xf32>
    %277 = arith.negf %276 : vector<2x96xf32>
    %278 = math.exp %277 : vector<2x96xf32>
    %cst_56 = arith.constant 1.000000e+00 : f32
    %279 = vector.broadcast %cst_56 : f32 to vector<2x96xf32>
    %280 = arith.addf %279, %278 : vector<2x96xf32>
    %281 = arith.divf %279, %280 : vector<2x96xf32>
    %282 = vector.extract_strided_slice %281 {offsets = [0, 0], sizes = [2, 32], strides = [1, 1]} : vector<2x96xf32> to vector<2x32xf32>
    %283 = vector.extract_strided_slice %281 {offsets = [0, 32], sizes = [2, 32], strides = [1, 1]} : vector<2x96xf32> to vector<2x32xf32>
    %284 = vector.extract_strided_slice %281 {offsets = [0, 64], sizes = [2, 32], strides = [1, 1]} : vector<2x96xf32> to vector<2x32xf32>
    %285 = vector.extract_strided_slice %275 {offsets = [0, 96], sizes = [2, 32], strides = [1, 1]} : vector<2x128xf32> to vector<2x32xf32>
    %286 = math.tanh %285 : vector<2x32xf32>
    %287 = arith.mulf %283, %270 : vector<2x32xf32>
    %288 = arith.mulf %282, %286 : vector<2x32xf32>
    %289 = arith.addf %287, %288 : vector<2x32xf32>
    %290 = math.tanh %289 : vector<2x32xf32>
    %291 = arith.mulf %284, %290 : vector<2x32xf32>
    %292 = vector.extract_strided_slice %174 {offsets = [12, 0], sizes = [2, 128], strides = [1, 1]} : vector<16x128xf32> to vector<2x128xf32>
    %cst_57 = arith.constant dense<0.000000e+00> : vector<2x128xf32>
    %293 = tpu.matmul %291, %175, %cst_57 {dimension_numbers = #tpu.dot_dimension_numbers<[1], [0], [0], [1], [0, 0, 1, 1], [], []>} : vector<2x32xf32>, vector<32x128xf32>, vector<2x128xf32> -> vector<2x128xf32>
    %294 = arith.addf %292, %293 : vector<2x128xf32>
    %295 = vector.extract_strided_slice %294 {offsets = [0, 0], sizes = [2, 96], strides = [1, 1]} : vector<2x128xf32> to vector<2x96xf32>
    %296 = arith.negf %295 : vector<2x96xf32>
    %297 = math.exp %296 : vector<2x96xf32>
    %cst_58 = arith.constant 1.000000e+00 : f32
    %298 = vector.broadcast %cst_58 : f32 to vector<2x96xf32>
    %299 = arith.addf %298, %297 : vector<2x96xf32>
    %300 = arith.divf %298, %299 : vector<2x96xf32>
    %301 = vector.extract_strided_slice %300 {offsets = [0, 0], sizes = [2, 32], strides = [1, 1]} : vector<2x96xf32> to vector<2x32xf32>
    %302 = vector.extract_strided_slice %300 {offsets = [0, 32], sizes = [2, 32], strides = [1, 1]} : vector<2x96xf32> to vector<2x32xf32>
    %303 = vector.extract_strided_slice %300 {offsets = [0, 64], sizes = [2, 32], strides = [1, 1]} : vector<2x96xf32> to vector<2x32xf32>
    %304 = vector.extract_strided_slice %294 {offsets = [0, 96], sizes = [2, 32], strides = [1, 1]} : vector<2x128xf32> to vector<2x32xf32>
    %305 = math.tanh %304 : vector<2x32xf32>
    %306 = arith.mulf %302, %289 : vector<2x32xf32>
    %307 = arith.mulf %301, %305 : vector<2x32xf32>
    %308 = arith.addf %306, %307 : vector<2x32xf32>
    %309 = math.tanh %308 : vector<2x32xf32>
    %310 = arith.mulf %303, %309 : vector<2x32xf32>
    %311 = vector.extract_strided_slice %174 {offsets = [14, 0], sizes = [2, 128], strides = [1, 1]} : vector<16x128xf32> to vector<2x128xf32>
    %cst_59 = arith.constant dense<0.000000e+00> : vector<2x128xf32>
    %312 = tpu.matmul %310, %175, %cst_59 {dimension_numbers = #tpu.dot_dimension_numbers<[1], [0], [0], [1], [0, 0, 1, 1], [], []>} : vector<2x32xf32>, vector<32x128xf32>, vector<2x128xf32> -> vector<2x128xf32>
    %313 = arith.addf %311, %312 : vector<2x128xf32>
    %314 = vector.extract_strided_slice %313 {offsets = [0, 0], sizes = [2, 96], strides = [1, 1]} : vector<2x128xf32> to vector<2x96xf32>
    %315 = arith.negf %314 : vector<2x96xf32>
    %316 = math.exp %315 : vector<2x96xf32>
    %cst_60 = arith.constant 1.000000e+00 : f32
    %317 = vector.broadcast %cst_60 : f32 to vector<2x96xf32>
    %318 = arith.addf %317, %316 : vector<2x96xf32>
    %319 = arith.divf %317, %318 : vector<2x96xf32>
    %320 = vector.extract_strided_slice %319 {offsets = [0, 0], sizes = [2, 32], strides = [1, 1]} : vector<2x96xf32> to vector<2x32xf32>
    %321 = vector.extract_strided_slice %319 {offsets = [0, 32], sizes = [2, 32], strides = [1, 1]} : vector<2x96xf32> to vector<2x32xf32>
    %322 = vector.extract_strided_slice %319 {offsets = [0, 64], sizes = [2, 32], strides = [1, 1]} : vector<2x96xf32> to vector<2x32xf32>
    %323 = vector.extract_strided_slice %313 {offsets = [0, 96], sizes = [2, 32], strides = [1, 1]} : vector<2x128xf32> to vector<2x32xf32>
    %324 = math.tanh %323 : vector<2x32xf32>
    %325 = arith.mulf %321, %308 : vector<2x32xf32>
    %326 = arith.mulf %320, %324 : vector<2x32xf32>
    %327 = arith.addf %325, %326 : vector<2x32xf32>
    %328 = math.tanh %327 : vector<2x32xf32>
    %329 = arith.mulf %322, %328 : vector<2x32xf32>
    %c0_61 = arith.constant 0 : index
    %c0_62 = arith.constant 0 : index
    %330 = vector.load %arg7[%c0_61, %c0_62] : memref<1x32xf32, #tpu.memory_space<vmem>>, vector<1x32xf32>
    %331 = vector.broadcast %330 : vector<1x32xf32> to vector<2x32xf32>
    %332 = arith.mulf %329, %331 : vector<2x32xf32>
    %cst_63 = arith.constant dense<0.000000e+00> : vector<2xf32>
    %333 = vector.multi_reduction <add>, %332, %cst_63 [1] : vector<2x32xf32> to vector<2xf32>
    %334 = vector.shape_cast %333 : vector<2xf32> to vector<2x1xf32>
    %c0_64 = arith.constant 0 : index
    %c0_65 = arith.constant 0 : index
    %335 = vector.load %arg8[%c0_64, %c0_65] : memref<1x1xf32, #tpu.memory_space<vmem>>, vector<1x1xf32>
    %336 = vector.broadcast %335 : vector<1x1xf32> to vector<2x1xf32>
    %337 = arith.addf %334, %336 : vector<2x1xf32>
    %c0_66 = arith.constant 0 : index
    %c0_67 = arith.constant 0 : index
    %338 = vector.load %arg9[%c0_66, %c0_67] : memref<2x1xf32, #tpu.memory_space<vmem>>, vector<2x1xf32>
    tpu.vector_store %arg9[%c0_66, %c0_67], %337 {strides = array<i32>} : memref<2x1xf32, #tpu.memory_space<vmem>>, vector<2x1xf32>,
    return
  }
}

</mosaic_0001>

<bundles_post_ra>
// kernel: lstm_model_forward.1
= control target key start
LH: loop header
LB: loop body
LE: loop exit
PB: predicated region body
PF: predicated region fallthrough
CT: control target
= control target key end

     0   :  { %s1918_s0 = inlined_call_operand.vmem [shape: f32[16,4], index: 0, kind: input, shape index: {}]   ;;  %s1919_s1 = inlined_call_operand.hbm [shape: f32[4,128], index: 1, kind: input, shape index: {}]   ;;  %s1920_s2 = inlined_call_operand.hbm [shape: f32[32,128], index: 2, kind: input, shape index: {}]   ;;  %s1921_s3 = inlined_call_operand.vmem [shape: f32[1,128], index: 3, kind: input, shape index: {}]   ;;  %s1922_s4 = inlined_call_operand.vmem [shape: f32[32,128], index: 4, kind: input, shape index: {}]   ;;  %s1923_s5 = inlined_call_operand.hbm [shape: f32[32,128], index: 5, kind: input, shape index: {}]   ;;  %s1924_s6 = inlined_call_operand.vmem [shape: f32[1,128], index: 6, kind: input, shape index: {}]   ;;  %s1925_s7 = inlined_call_operand.hbm [shape: f32[1,32], index: 7, kind: input, shape index: {}]   ;;  %s1926_s8 = inlined_call_operand.<no memory space> [shape: f32[1,1], index: 8, kind: input, shape index: {}]   ;;  %s1927_s9 = inlined_call_operand.vmem [shape: f32[2,1], index: 9, kind: output, shape index: {}]  }
   0x1   :  { %v14_v0 = vstv %s1926_s8 }
   0x2   :  { %15 = vst [vmem:[#allocation3] sm:$0x1] %v14_v0 }
   0x3   :  { %16 = vsyncpa [#allocation5], 0 }
   0x4   :  { %17 = vsyncpa [#allocation7], 0  ;;  %s36_s13 = sshll.u32 %s1920_s2, 4  ;;  %s37_s13 = int_to_ptr.hbm [resolvable:$true] %s36_s13 }
   0x5   :  { %18 = vsyncpa [#allocation10], 0  ;;  %s1610_s14 = smov [#allocation6]   ;;  %s26_s18 = sshll.u32 %s1919_s1, 4  ;;  %s27_s18 = int_to_ptr.hbm [resolvable:$true] %s26_s18 }
   0x6   :  { %s38_s15 = sshll.u32 %s1610_s14, 4  ;;  %s1611_s19 = smov 128   ;;  %s39_s15 = int_to_ptr.vmem [resolvable:$true] %s38_s15 }
   0x7   :  { %s1612_s20 = smov 8   ;;  %s1613_s8 = smov [#allocation4]  }
   0x8   :  { %44 = dma.hbm_to_vmem [thread:$0]  %s37_s13, 512, %s39_s15, [#allocation7], %s1611_s19, %s1611_s19, %s1612_s20  }
   0x9   :  { %s28_s21 = sshll.u32 %s1613_s8, 4  ;;  %s53_s24 = sshll.u32 %s1923_s5, 4  ;;  %s29_s21 = int_to_ptr.vmem [resolvable:$true] %s28_s21  ;;  %s54_s24 = int_to_ptr.hbm [resolvable:$true] %s53_s24 }
   0xa   :  { %31 = dma.hbm_to_vmem [thread:$0]  %s27_s18, 64, %s29_s21, [#allocation5]  }
   0xb   :  { %s69_s26 = sshll.u32 %s1925_s7, 4  ;;  %s1614_s27 = smov [#allocation8]   ;;  %s70_s26 = int_to_ptr.hbm [resolvable:$true] %s69_s26 }
   0xc   :  { %s55_s28 = sshll.u32 %s1614_s27, 4  ;;  %s1615_s1 = smov [#allocation9]   ;;  %s56_s28 = int_to_ptr.vmem [resolvable:$true] %s55_s28 }
   0xd   :  { %61 = dma.hbm_to_vmem [thread:$0]  %s54_s24, 512, %s56_s28, [#allocation7], %s1611_s19, %s1611_s19, %s1612_s20  }
   0xe   :  { %s71_s29 = sshll.u32 %s1615_s1, 4  ;;  %s72_s29 = int_to_ptr.vmem [resolvable:$true] %s71_s29 }
   0xf   :  { %74 = dma.hbm_to_vmem [thread:$0]  %s70_s26, 16, %s72_s29, [#allocation10]  }
  0x10   :  { %1604 = dma.done.wait [#allocation5], 64  }
  0x11   :  { %1605 = vsyncadd [#allocation5], 4294967232 }
  0x12   :  { %1606 = dma.done.wait [#allocation7], 1024  }
  0x13   :  { %1607 = vsyncadd [#allocation7], 4294966272 }
  0x14   :  { %1608 = dma.done.wait [#allocation10], 16  }
  0x15   :  { %1609 = vsyncadd [#allocation10], 4294967280  ;;  %vm107_vm0 = vcmask 1043456   ;;  %vm100_vm1 = vcmask 31744   ;;  %v137_v1 = vld [vmem:[#allocation6 + $0x18] sm:$0xff]  ;;  %v136_v2 = vld [vmem:[#allocation6 + $0x10] sm:$0xff] }
  0x16   :  { %v95_v3 = vld [vmem:[#allocation4] sm:$0xf]  ;;  %154 = vmatpush.msra.mxu1 %v137_v1  ;;  %v93_v4 = vld [vmem:[%s1918_s0] sm:$0xff]  ;;  %220 = vmatpush.msra.mxu2 %v137_v1  ;;  %v134_v6 = vld [vmem:[#allocation6] sm:$0xff]  ;;  %v1616_v7 = vmov 0.0   ;;  %s1617_s11 = smov 32  }
  0x17   :  { %1332 = vmatpush.msk.msra.mxu0 %vm107_vm0, %v95_v3  ;;  %v135_v5 = vld [vmem:[#allocation6 + $0x8] sm:$0xff]  ;;  %295 = vmatpush.msra.mxu3 %v137_v1  ;;  %vm204_vm6 = vcmask 254976   ;;  %vm138_vm7 = vcmask 261120  }
  0x18   :  { %1333 = vmatmul.msk.f32.vlgmr.msra.gmra.mxu0 %vm100_vm1, %v93_v4  ;;  %155 = vmatpush.msra.mxu1 %v136_v2  ;;  %v1692_v8 = vld [vmem:[%s1921_s3] ss:$0 sm:$0xff]  ;;  %s1618_s3 = smov 64  }
  0x19   :  { %221 = vmatpush.msra.mxu2 %v136_v2  ;;  %587 = vmatpush.msrb.mxu0 %v137_v1 }
  0x1a   :  { %156 = vmatpush.msra.mxu1 %v135_v5  ;;  %296 = vmatpush.msra.mxu3 %v136_v2 }
  0x1b   :  { %222 = vmatpush.msra.mxu2 %v135_v5  ;;  %588 = vmatpush.msrb.mxu0 %v136_v2 }
  0x1c   :  { %157 = vmatpush.msra.mxu1 %v134_v6  ;;  %297 = vmatpush.msra.mxu3 %v135_v5 }
  0x1d   :  { %158 = vmatmul.f32.vlgmr.msra.gmra.mxu1 %v1616_v7  ;;  %223 = vmatpush.msra.mxu2 %v134_v6 }
  0x1e   :  { %298 = vmatpush.msra.mxu3 %v134_v6  ;;  %370 = vmatpush.msrb.mxu1 %v137_v1 }
  0x1f   :  { %445 = vmatpush.msrb.mxu2 %v137_v1  ;;  %589 = vmatpush.msrb.mxu0 %v135_v5 }
  0x20   :  { %513 = vmatpush.msrb.mxu3 %v137_v1  ;;  %371 = vmatpush.msrb.mxu1 %v136_v2 }
  0x21   :  { %446 = vmatpush.msrb.mxu2 %v136_v2  ;;  %590 = vmatpush.msrb.mxu0 %v134_v6 }
  0x22   :  { %514 = vmatpush.msrb.mxu3 %v136_v2  ;;  %372 = vmatpush.msrb.mxu1 %v135_v5 }
  0x23   :  { %447 = vmatpush.msrb.mxu2 %v135_v5 }
  0x24   :  { %515 = vmatpush.msrb.mxu3 %v135_v5  ;;  %373 = vmatpush.msrb.mxu1 %v134_v6 }
  0x25   :  { %448 = vmatpush.msrb.mxu2 %v134_v6 }
  0x26   :  { %516 = vmatpush.msrb.mxu3 %v134_v6  ;;  %661 = vmatpush.msra.mxu1 %v137_v1 }
  0x28   :  { %662 = vmatpush.msra.mxu1 %v136_v2 }
  0x2a   :  { %663 = vmatpush.msra.mxu1 %v135_v5 }
  0x2c   :  { %664 = vmatpush.msra.mxu1 %v134_v6 }
  0x95   :  { %v128_v9 = vpop.f32.mrf.mxu0 }
  0x96   :  { %v1695_v10 = vadd.f32 %v1692_v8, %v128_v9 }
  0x9a   :  { %v159_v11 = vpop.f32.mrf.mxu1 }
  0x9b   :  { %v162_v12 = vadd.f32 %v159_v11, %v1695_v10 }
  0x9d   :  { %1380 = vtanh.f32 %v162_v12  ;;  %v1335_v14 = vmul.f32 -1.442695, %v162_v12 }
  0x9f   :  { %1382 = vpow2.f32 %v1335_v14 }
  0xa3   :  { %v1381_v13 = vpop.eup %1380 }
  0xa4   :  { %185 = vrot.lane.b32.xlu0 %v1381_v13, %s1617_s11 }
  0xa5   :  { %v1383_v15 = vpop.eup %1382 }
  0xa6   :  { %v166_v16 = vadd.f32 1.0, %v1383_v15 }
  0xa8   :  { %1384 = vrcp.f32 %v166_v16  ;;  %v178_v22 = vand.u32 2147483648, %v166_v16  ;;  %vm172_vm3 = vweird.f32 %v166_v16  ;;  %v176_v23 = vand.u32 2147483647, %v166_v16 }
  0xaa   :  { %v179_v25 = vor.u32 1.1754944e-38, %v178_v22  ;;  %vm177_vm5 = vcmp.eq.f32.partialorder %v176_v23, 8.507059e+37 }
  0xae   :  { %v1385_v17 = vpop.eup %1384 }
  0xaf   :  { %v168_v18 = vmul.f32 %v1385_v17, %v166_v16  ;;  %vm173_vm2 = vweird.f32 %v1385_v17 }
  0xb0   :  { %vm174_vm4 = vmor %vm172_vm3, %vm173_vm2 }
  0xb1   :  { %v169_v19 = vsub.f32 1.0, %v168_v18 }
  0xb3   :  { %v170_v20 = vmul.f32 %v1385_v17, %v169_v19 }
  0xb5   :  { %v171_v21 = vadd.f32 %v1385_v17, %v170_v20 }
  0xb7   :  { %v175_v24 = vsel %vm174_vm4, %v1385_v17, %v171_v21 }
  0xb8   :  { %v180_v27 = vsel %vm177_vm5, %v179_v25, %v175_v24 }
  0xb9   :  { %v183_v29 = vmul.f32 0.0, %v180_v27 }
 0x116   :  { %v186_v26 = vpop.permute.xlu0 %185 }
 0x117   :  { %v188_v28 = vmul.f32 %v186_v26, %v180_v27 }
 0x119   :  { %190 = vrot.lane.b32.xlu0 %v188_v28, %s1617_s11 }
 0x18b   :  { %v191_v30 = vpop.permute.xlu0 %190 }
 0x18c   :  { %v193_v31 = vadd.f32 %v191_v30, %v183_v29 }
 0x18e   :  { %1386 = vtanh.f32 %v193_v31  ;;  %v253_v55 = vrot.slane %v193_v31, 6 }
 0x194   :  { %v1387_v32 = vpop.eup %1386 }
 0x195   :  { %196 = vrot.lane.b32.xlu1 %v1387_v32, %s1617_s11 }
 0x207   :  { %v197_v33 = vpop.permute.xlu1 %196 }
 0x208   :  { %v199_v34 = vmul.f32 %v197_v33, %v180_v27 }
 0x20a   :  { %201 = vrot.lane.b32.xlu1 %v199_v34, %s1618_s3 }
 0x27c   :  { %v202_v35 = vpop.permute.xlu1 %201 }
 0x27d   :  { %205 = vst.msk [vmem:[#allocation2] sm:$0x3] %vm204_vm6, %v202_v35  ;;  %1336 = vmatmul.msk.f32.vlgmr.msra.gmra.mxu2 %vm138_vm7, %v202_v35 }
 0x300   :  { %v225_v36 = vpop.f32.mrf.mxu2 }
 0x301   :  { %v229_v37 = vrot.slane %v225_v36, 6 }
 0x303   :  { %v231_v38 = vadd.f32 %v229_v37, %v1695_v10 }
 0x305   :  { %1388 = vtanh.f32 %v231_v38  ;;  %v1337_v40 = vmul.f32 -1.442695, %v231_v38 }
 0x307   :  { %1390 = vpow2.f32 %v1337_v40 }
 0x30b   :  { %v1389_v39 = vpop.eup %1388 }
 0x30c   :  { %257 = vrot.lane.b32.xlu2 %v1389_v39, %s1617_s11 }
 0x30d   :  { %v1391_v41 = vpop.eup %1390 }
 0x30e   :  { %v235_v42 = vadd.f32 1.0, %v1391_v41 }
 0x310   :  { %1392 = vrcp.f32 %v235_v42  ;;  %v247_v48 = vand.u32 2147483648, %v235_v42  ;;  %vm241_vm9 = vweird.f32 %v235_v42  ;;  %v245_v49 = vand.u32 2147483647, %v235_v42 }
 0x312   :  { %v248_v51 = vor.u32 1.1754944e-38, %v247_v48  ;;  %vm246_vm11 = vcmp.eq.f32.partialorder %v245_v49, 8.507059e+37 }
 0x316   :  { %v1393_v43 = vpop.eup %1392 }
 0x317   :  { %v237_v44 = vmul.f32 %v1393_v43, %v235_v42  ;;  %vm242_vm8 = vweird.f32 %v1393_v43 }
 0x318   :  { %vm243_vm10 = vmor %vm241_vm9, %vm242_vm8 }
 0x319   :  { %v238_v45 = vsub.f32 1.0, %v237_v44 }
 0x31b   :  { %v239_v46 = vmul.f32 %v1393_v43, %v238_v45 }
 0x31d   :  { %v240_v47 = vadd.f32 %v1393_v43, %v239_v46 }
 0x31f   :  { %v244_v50 = vsel %vm243_vm10, %v1393_v43, %v240_v47  ;;  %vm276_vm10 = vcmask 257026  }
 0x320   :  { %v249_v53 = vsel %vm246_vm11, %v248_v51, %v244_v50  ;;  %vm351_vm11 = vcmask 259076  }
 0x321   :  { %v255_v56 = vmul.f32 %v253_v55, %v249_v53 }
 0x366   :  { %v258_v52 = vpop.permute.xlu2 %257 }
 0x367   :  { %v260_v54 = vmul.f32 %v258_v52, %v249_v53 }
 0x369   :  { %262 = vrot.lane.b32.xlu2 %v260_v54, %s1617_s11 }
 0x3c3   :  { %v263_v57 = vpop.permute.xlu2 %262 }
 0x3c4   :  { %v265_v58 = vadd.f32 %v263_v57, %v255_v56  ;;  %v94_v57 = vld [vmem:[%s1918_s0 + $0x8] sm:$0xff] }
 0x3c5   :  { %1334 = vmatmul.msk.f32.gmra.mxu0 %vm100_vm1, %v94_v57 }
 0x3c6   :  { %1394 = vtanh.f32 %v265_v58  ;;  %v328_v22 = vrot.slane %v265_v58, 6 }
 0x3cc   :  { %v1395_v59 = vpop.eup %1394 }
 0x3cd   :  { %268 = vrot.lane.b32.xlu0 %v1395_v59, %s1617_s11 }
 0x43f   :  { %v269_v60 = vpop.permute.xlu0 %268 }
 0x440   :  { %v1708_v61 = vmul.f32 %v269_v60, %v249_v53 }
 0x442   :  { %v278_v62 = vrot.slane %v1708_v61, 2  ;;  %v131_v59 = vpop.f32.mrf.mxu0 }
 0x443   :  { %v1733_v60 = vadd.f32 %v1692_v8, %v131_v59 }
 0x444   :  { %279 = vrot.lane.b32.xlu1 %v278_v62, %s1618_s3 }
 0x4b6   :  { %v280_v63 = vpop.permute.xlu1 %279 }
 0x4b7   :  { %1338 = vmatmul.msk.f32.vlgmr.msra.gmra.mxu3 %vm138_vm7, %v280_v63 }
 0x53a   :  { %v300_v0 = vpop.f32.mrf.mxu3 }
 0x53b   :  { %v304_v1 = vrot.slane %v300_v0, 4 }
 0x53d   :  { %v306_v2 = vadd.f32 %v304_v1, %v1695_v10 }
 0x53f   :  { %1396 = vtanh.f32 %v306_v2  ;;  %v1339_v4 = vmul.f32 -1.442695, %v306_v2 }
 0x541   :  { %1398 = vpow2.f32 %v1339_v4 }
 0x545   :  { %v1397_v3 = vpop.eup %1396 }
 0x546   :  { %332 = vrot.lane.b32.xlu2 %v1397_v3, %s1617_s11 }
 0x547   :  { %v1399_v5 = vpop.eup %1398 }
 0x548   :  { %v310_v6 = vadd.f32 1.0, %v1399_v5 }
 0x54a   :  { %1400 = vrcp.f32 %v310_v6  ;;  %v322_v15 = vand.u32 2147483648, %v310_v6  ;;  %vm316_vm13 = vweird.f32 %v310_v6  ;;  %v320_v16 = vand.u32 2147483647, %v310_v6 }
 0x54c   :  { %v323_v18 = vor.u32 1.1754944e-38, %v322_v15  ;;  %vm321_vm15 = vcmp.eq.f32.partialorder %v320_v16, 8.507059e+37 }
 0x550   :  { %v1401_v9 = vpop.eup %1400 }
 0x551   :  { %v312_v11 = vmul.f32 %v1401_v9, %v310_v6  ;;  %vm317_vm12 = vweird.f32 %v1401_v9 }
 0x552   :  { %vm318_vm14 = vmor %vm316_vm13, %vm317_vm12  ;;  %vm426_vm12 = vcmask 261126  }
 0x553   :  { %v313_v12 = vsub.f32 1.0, %v312_v11 }
 0x555   :  { %v314_v13 = vmul.f32 %v1401_v9, %v313_v12 }
 0x557   :  { %v315_v14 = vadd.f32 %v1401_v9, %v314_v13 }
 0x559   :  { %v319_v17 = vsel %vm318_vm14, %v1401_v9, %v315_v14 }
 0x55a   :  { %v324_v20 = vsel %vm321_vm15, %v323_v18, %v319_v17 }
 0x55b   :  { %v330_v23 = vmul.f32 %v328_v22, %v324_v20 }
 0x5a0   :  { %v333_v19 = vpop.permute.xlu2 %332 }
 0x5a1   :  { %v335_v21 = vmul.f32 %v333_v19, %v324_v20 }
 0x5a3   :  { %337 = vrot.lane.b32.xlu0 %v335_v21, %s1617_s11 }
 0x615   :  { %v338_v24 = vpop.permute.xlu0 %337 }
 0x616   :  { %v340_v25 = vadd.f32 %v338_v24, %v330_v23 }
 0x618   :  { %1402 = vtanh.f32 %v340_v25  ;;  %v403_v49 = vrot.slane %v340_v25, 6 }
 0x61e   :  { %v1403_v26 = vpop.eup %1402 }
 0x61f   :  { %343 = vrot.lane.b32.xlu1 %v1403_v26, %s1617_s11  ;;  %v723_v26 = vld [vmem:[%s1922_s4 + $0x18] sm:$0xff] }
 0x620   :  { %746 = vmatpush.msra.mxu2 %v723_v26 }
 0x691   :  { %v344_v27 = vpop.permute.xlu1 %343 }
 0x692   :  { %v1717_v28 = vmul.f32 %v344_v27, %v324_v20  ;;  %v722_v27 = vld [vmem:[%s1922_s4 + $0x10] sm:$0xff] }
 0x693   :  { %747 = vmatpush.msra.mxu2 %v722_v27 }
 0x694   :  { %v353_v29 = vrot.slane %v1717_v28, 4 }
 0x696   :  { %354 = vrot.lane.b32.xlu2 %v353_v29, %s1618_s3  ;;  %v1756_v29 = vld [vmem:[#allocation8 + $0x18] sm:$0xff] }
 0x697   :  { %773 = vmatpush.msra.mxu3 %v1756_v29  ;;  %836 = vmatpush.msra.mxu0 %v1756_v29 }
 0x6f0   :  { %v355_v30 = vpop.permute.xlu2 %354 }
 0x6f1   :  { %1340 = vmatmul.msk.f32.vlgmr.msrb.gmra.mxu1 %vm138_vm7, %v355_v30  ;;  %v721_v30 = vld [vmem:[%s1922_s4 + $0x8] sm:$0xff] }
 0x6f2   :  { %906 = vmatpush.msrb.mxu1 %v1756_v29  ;;  %748 = vmatpush.msra.mxu2 %v721_v30 }
 0x76e   :  { %v375_v31 = vpop.f32.mrf.mxu1 }
 0x76f   :  { %v379_v32 = vrot.slane %v375_v31, 2  ;;  %v1764_v31 = vld [vmem:[#allocation8 + $0x8] sm:$0xff] }
 0x771   :  { %v381_v33 = vadd.f32 %v379_v32, %v1695_v10  ;;  %v720_v32 = vld [vmem:[%s1922_s4] sm:$0xff] }
 0x772   :  { %749 = vmatpush.msra.mxu2 %v720_v32 }
 0x773   :  { %1404 = vtanh.f32 %v381_v33  ;;  %v1341_v35 = vmul.f32 -1.442695, %v381_v33  ;;  %v1777_v33 = vld [vmem:[#allocation8] sm:$0xff] }
 0x775   :  { %1406 = vpow2.f32 %v1341_v35 }
 0x779   :  { %v1405_v34 = vpop.eup %1404 }
 0x77a   :  { %407 = vrot.lane.b32.xlu0 %v1405_v34, %s1617_s11 }
 0x77b   :  { %v1407_v36 = vpop.eup %1406 }
 0x77c   :  { %v385_v37 = vadd.f32 1.0, %v1407_v36 }
 0x77e   :  { %1408 = vrcp.f32 %v385_v37  ;;  %v397_v43 = vand.u32 2147483648, %v385_v37  ;;  %vm391_vm2 = vweird.f32 %v385_v37  ;;  %v395_v44 = vand.u32 2147483647, %v385_v37 }
 0x780   :  { %v398_v45 = vor.u32 1.1754944e-38, %v397_v43  ;;  %vm396_vm4 = vcmp.eq.f32.partialorder %v395_v44, 8.507059e+37 }
 0x784   :  { %v1409_v38 = vpop.eup %1408 }
 0x785   :  { %v387_v39 = vmul.f32 %v1409_v38, %v385_v37  ;;  %vm392_vm0 = vweird.f32 %v1409_v38 }
 0x786   :  { %vm393_vm3 = vmor %vm391_vm2, %vm392_vm0 }
 0x787   :  { %v388_v40 = vsub.f32 1.0, %v387_v39 }
 0x789   :  { %v389_v41 = vmul.f32 %v1409_v38, %v388_v40 }
 0x78b   :  { %v390_v42 = vadd.f32 %v1409_v38, %v389_v41 }
 0x78d   :  { %v394_v10 = vsel %vm393_vm3, %v1409_v38, %v390_v42 }
 0x78e   :  { %v399_v47 = vsel %vm396_vm4, %v398_v45, %v394_v10 }
 0x78f   :  { %v405_v50 = vmul.f32 %v403_v49, %v399_v47 }
 0x7ec   :  { %v408_v46 = vpop.permute.xlu0 %407 }
 0x7ed   :  { %v410_v48 = vmul.f32 %v408_v46, %v399_v47 }
 0x7ef   :  { %412 = vrot.lane.b32.xlu1 %v410_v48, %s1617_s11 }
 0x861   :  { %v413_v51 = vpop.permute.xlu1 %412 }
 0x862   :  { %v415_v52 = vadd.f32 %v413_v51, %v405_v50 }
 0x864   :  { %1410 = vtanh.f32 %v415_v52  ;;  %v475_v18 = vrot.slane %v415_v52, 6 }
 0x86a   :  { %v1411_v53 = vpop.eup %1410 }
 0x86b   :  { %418 = vrot.lane.b32.xlu2 %v1411_v53, %s1617_s11 }
 0x8c5   :  { %v419_v54 = vpop.permute.xlu2 %418 }
 0x8c6   :  { %v421_v55 = vmul.f32 %v419_v54, %v399_v47 }
 0x8c8   :  { %v428_v56 = vrot.slane %v421_v55, 6 }
 0x8ca   :  { %429 = vrot.lane.b32.xlu0 %v428_v56, %s1618_s3 }
 0x93c   :  { %v430_v58 = vpop.permute.xlu0 %429 }
 0x93d   :  { %1342 = vmatmul.msk.f32.vlgmr.msrb.gmra.mxu2 %vm138_vm7, %v430_v58 }
 0x93e   :  { %1182 = vmatpush.msrb.mxu2 %v1756_v29 }
 0x9c0   :  { %v450_v62 = vpop.f32.mrf.mxu2 }
 0x9c1   :  { %v453_v63 = vadd.f32 %v450_v62, %v1733_v60 }
 0x9c3   :  { %1412 = vtanh.f32 %v453_v63  ;;  %v1343_v1 = vmul.f32 -1.442695, %v453_v63 }
 0x9c5   :  { %1414 = vpow2.f32 %v1343_v1 }
 0x9c9   :  { %v1413_v0 = vpop.eup %1412 }
 0x9ca   :  { %479 = vrot.lane.b32.xlu1 %v1413_v0, %s1617_s11 }
 0x9cb   :  { %v1415_v2 = vpop.eup %1414 }
 0x9cc   :  { %v457_v3 = vadd.f32 1.0, %v1415_v2 }
 0x9ce   :  { %1416 = vrcp.f32 %v457_v3  ;;  %v469_v8 = vand.u32 2147483648, %v457_v3  ;;  %vm463_vm5 = vweird.f32 %v457_v3  ;;  %v467_v12 = vand.u32 2147483647, %v457_v3 }
 0x9d0   :  { %v470_v14 = vor.u32 1.1754944e-38, %v469_v8  ;;  %vm468_vm9 = vcmp.eq.f32.partialorder %v467_v12, 8.507059e+37 }
 0x9d4   :  { %v1417_v4 = vpop.eup %1416 }
 0x9d5   :  { %v459_v5 = vmul.f32 %v1417_v4, %v457_v3  ;;  %vm464_vm1 = vweird.f32 %v1417_v4 }
 0x9d6   :  { %vm465_vm8 = vmor %vm463_vm5, %vm464_vm1 }
 0x9d7   :  { %v460_v6 = vsub.f32 1.0, %v459_v5 }
 0x9d9   :  { %v461_v9 = vmul.f32 %v1417_v4, %v460_v6 }
 0x9db   :  { %v462_v11 = vadd.f32 %v1417_v4, %v461_v9 }
 0x9dd   :  { %v466_v13 = vsel %vm465_vm8, %v1417_v4, %v462_v11 }
 0x9de   :  { %v471_v16 = vsel %vm468_vm9, %v470_v14, %v466_v13 }
 0x9df   :  { %v477_v19 = vmul.f32 %v475_v18, %v471_v16 }
 0xa3c   :  { %v480_v15 = vpop.permute.xlu1 %479 }
 0xa3d   :  { %v482_v17 = vmul.f32 %v480_v15, %v471_v16 }
 0xa3f   :  { %484 = vrot.lane.b32.xlu2 %v482_v17, %s1617_s11 }
 0xa47   :  { %273 = vrot.lane.b32.xlu2 %v1708_v61, %s1618_s3 }
 0xa99   :  { %v485_v20 = vpop.permute.xlu2 %484 }
 0xa9a   :  { %v1740_v21 = vadd.f32 %v485_v20, %v477_v19 }
 0xa9c   :  { %1418 = vtanh.f32 %v1740_v21  ;;  %v546_v15 = vrot.slane %v1740_v21, 6 }
 0xaa1   :  { %v274_v22 = vpop.permute.xlu2 %273 }
 0xaa2   :  { %v1419_v23 = vpop.eup %1418  ;;  %277 = vst.msk [vmem:[#allocation2] sm:$0xc] %vm276_vm10, %v274_v22 }
 0xaa3   :  { %490 = vrot.lane.b32.xlu0 %v1419_v23, %s1617_s11 }
 0xaab   :  { %348 = vrot.lane.b32.xlu0 %v1717_v28, %s1618_s3  ;;  %v1759_v28 = vld [vmem:[#allocation8 + $0x10] sm:$0xff] }
 0xaac   :  { %774 = vmatpush.msra.mxu3 %v1759_v28  ;;  %837 = vmatpush.msra.mxu0 %v1759_v28 }
 0xaad   :  { %907 = vmatpush.msrb.mxu1 %v1759_v28  ;;  %1183 = vmatpush.msrb.mxu2 %v1759_v28 }
 0xaae   :  { %775 = vmatpush.msra.mxu3 %v1764_v31  ;;  %838 = vmatpush.msra.mxu0 %v1764_v31 }
 0xaaf   :  { %908 = vmatpush.msrb.mxu1 %v1764_v31  ;;  %1184 = vmatpush.msrb.mxu2 %v1764_v31 }
 0xab0   :  { %776 = vmatpush.msra.mxu3 %v1777_v33  ;;  %839 = vmatpush.msra.mxu0 %v1777_v33 }
 0xab1   :  { %909 = vmatpush.msrb.mxu1 %v1777_v33  ;;  %1185 = vmatpush.msrb.mxu2 %v1777_v33 }
 0xb15   :  { %v491_v24 = vpop.permute.xlu0 %490 }
 0xb16   :  { %v493_v25 = vmul.f32 %v491_v24, %v471_v16 }
 0xb18   :  { %495 = vrot.lane.b32.xlu1 %v493_v25, %s1618_s3 }
 0xb1d   :  { %v349_v61 = vpop.permute.xlu0 %348 }
 0xb1e   :  { %352 = vst.msk [vmem:[#allocation2] sm:$0x30] %vm351_vm11, %v349_v61 }
 0xb20   :  { %423 = vrot.lane.b32.xlu1 %v421_v55, %s1618_s3 }
 0xb8a   :  { %v496_v34 = vpop.permute.xlu1 %495 }
 0xb8b   :  { %498 = vst.msk [vmem:[#allocation2 + $0x8] sm:$0x3] %vm204_vm6, %v496_v34  ;;  %1344 = vmatmul.msk.f32.vlgmr.msrb.gmra.mxu3 %vm138_vm7, %v496_v34 }
 0xb8c   :  { %976 = vmatpush.msrb.mxu3 %v1756_v29 }
 0xb8e   :  { %977 = vmatpush.msrb.mxu3 %v1759_v28 }
 0xb90   :  { %978 = vmatpush.msrb.mxu3 %v1764_v31 }
 0xb92   :  { %v424_v35 = vpop.permute.xlu1 %423  ;;  %979 = vmatpush.msrb.mxu3 %v1777_v33 }
 0xb93   :  { %427 = vst.msk [vmem:[#allocation2] sm:$0xc0] %vm426_vm12, %v424_v35  ;;  %777 = vmatmul.f32.vlgmr.msra.gmra.mxu3 %v1616_v7  ;;  %v1804_v7 = vld [vmem:[%s1924_s6] ss:$0 sm:$0xff] }
 0xb94   :  { %1252 = vmatpush.msra.mxu3 %v1756_v29 }
 0xb96   :  { %1253 = vmatpush.msra.mxu3 %v1759_v28 }
 0xb98   :  { %1254 = vmatpush.msra.mxu3 %v1764_v31 }
 0xb9a   :  { %v718_v36 = vld [vmem:[#allocation2] sm:$0xff]  ;;  %1255 = vmatpush.msra.mxu3 %v1777_v33 }
 0xb9b   :  { %1350 = vmatmul.msk.f32.vlgmr.msra.gmra.mxu2 %vm138_vm7, %v718_v36 }
 0xc0e   :  { %v518_v37 = vpop.f32.mrf.mxu3 }
 0xc0f   :  { %v522_v38 = vrot.slane %v518_v37, 6 }
 0xc11   :  { %v524_v39 = vadd.f32 %v522_v38, %v1733_v60 }
 0xc13   :  { %1420 = vtanh.f32 %v524_v39  ;;  %v1345_v45 = vmul.f32 -1.442695, %v524_v39 }
 0xc16   :  { %v778_v42 = vpop.f32.mrf.mxu3 }
 0xc19   :  { %v1421_v40 = vpop.eup %1420 }
 0xc1a   :  { %550 = vrot.lane.b32.xlu2 %v1421_v40, %s1617_s11 }
 0xc1e   :  { %v751_v41 = vpop.f32.mrf.mxu2 }
 0xc1f   :  { %v1807_v43 = vadd.f32 %v1804_v7, %v751_v41 }
 0xc21   :  { %v781_v44 = vadd.f32 %v778_v42, %v1807_v43 }
 0xc23   :  { %1422 = vtanh.f32 %v781_v44  ;;  %v1352_v54 = vmul.f32 -1.442695, %v781_v44 }
 0xc24   :  { %1424 = vpow2.f32 %v1345_v45 }
 0xc29   :  { %v1423_v10 = vpop.eup %1422 }
 0xc2a   :  { %804 = vrot.lane.b32.xlu0 %v1423_v10, %s1617_s11  ;;  %v1425_v46 = vpop.eup %1424 }
 0xc2b   :  { %v528_v47 = vadd.f32 1.0, %v1425_v46 }
 0xc2d   :  { %1426 = vrcp.f32 %v528_v47  ;;  %v540_v53 = vand.u32 2147483648, %v528_v47  ;;  %vm534_vm13 = vweird.f32 %v528_v47  ;;  %v538_v55 = vand.u32 2147483647, %v528_v47 }
 0xc2e   :  { %1428 = vpow2.f32 %v1352_v54 }
 0xc2f   :  { %v541_v57 = vor.u32 1.1754944e-38, %v540_v53  ;;  %vm539_vm15 = vcmp.eq.f32.partialorder %v538_v55, 8.507059e+37 }
 0xc33   :  { %v1427_v48 = vpop.eup %1426 }
 0xc34   :  { %v530_v49 = vmul.f32 %v1427_v48, %v528_v47  ;;  %vm535_vm6 = vweird.f32 %v1427_v48  ;;  %v1429_v63 = vpop.eup %1428 }
 0xc35   :  { %vm536_vm14 = vmor %vm534_vm13, %vm535_vm6  ;;  %v785_v0 = vadd.f32 1.0, %v1429_v63 }
 0xc36   :  { %v531_v50 = vsub.f32 1.0, %v530_v49 }
 0xc37   :  { %1430 = vrcp.f32 %v785_v0  ;;  %v797_v6 = vand.u32 2147483648, %v785_v0  ;;  %vm791_vm2 = vweird.f32 %v785_v0  ;;  %v795_v9 = vand.u32 2147483647, %v785_v0 }
 0xc38   :  { %v532_v51 = vmul.f32 %v1427_v48, %v531_v50 }
 0xc39   :  { %v798_v8 = vor.u32 1.1754944e-38, %v797_v6  ;;  %vm796_vm4 = vcmp.eq.f32.partialorder %v795_v9, 8.507059e+37 }
 0xc3a   :  { %v533_v52 = vadd.f32 %v1427_v48, %v532_v51 }
 0xc3c   :  { %v537_v56 = vsel %vm536_vm14, %v1427_v48, %v533_v52 }
 0xc3d   :  { %v542_v59 = vsel %vm539_vm15, %v541_v57, %v537_v56  ;;  %v1431_v1 = vpop.eup %1430 }
 0xc3e   :  { %v787_v2 = vmul.f32 %v1431_v1, %v785_v0  ;;  %vm792_vm0 = vweird.f32 %v1431_v1  ;;  %v548_v16 = vmul.f32 %v546_v15, %v542_v59 }
 0xc3f   :  { %vm793_vm3 = vmor %vm791_vm2, %vm792_vm0 }
 0xc40   :  { %v788_v3 = vsub.f32 1.0, %v787_v2 }
 0xc42   :  { %v789_v4 = vmul.f32 %v1431_v1, %v788_v3 }
 0xc44   :  { %v790_v5 = vadd.f32 %v1431_v1, %v789_v4 }
 0xc46   :  { %v794_v11 = vsel %vm793_vm3, %v1431_v1, %v790_v5 }
 0xc47   :  { %v799_v13 = vsel %vm796_vm4, %v798_v8, %v794_v11 }
 0xc48   :  { %v802_v20 = vmul.f32 0.0, %v799_v13 }
 0xc74   :  { %v551_v58 = vpop.permute.xlu2 %550 }
 0xc75   :  { %v553_v62 = vmul.f32 %v551_v58, %v542_v59 }
 0xc77   :  { %555 = vrot.lane.b32.xlu1 %v553_v62, %s1617_s11 }
 0xc9c   :  { %v805_v12 = vpop.permute.xlu0 %804 }
 0xc9d   :  { %v807_v14 = vmul.f32 %v805_v12, %v799_v13 }
 0xc9f   :  { %809 = vrot.lane.b32.xlu2 %v807_v14, %s1617_s11 }
 0xce9   :  { %v556_v17 = vpop.permute.xlu1 %555 }
 0xcea   :  { %v1814_v18 = vadd.f32 %v556_v17, %v548_v16 }
 0xcec   :  { %1432 = vtanh.f32 %v1814_v18  ;;  %v620_v12 = vrot.slane %v1814_v18, 6 }
 0xcf2   :  { %v1433_v19 = vpop.eup %1432 }
 0xcf3   :  { %561 = vrot.lane.b32.xlu0 %v1433_v19, %s1617_s11 }
 0xcf9   :  { %v810_v22 = vpop.permute.xlu2 %809 }
 0xcfa   :  { %v1818_v23 = vadd.f32 %v810_v22, %v802_v20 }
 0xcfc   :  { %1434 = vtanh.f32 %v1818_v23  ;;  %v869_v17 = vrot.slane %v1818_v23, 6 }
 0xd02   :  { %v1435_v24 = vpop.eup %1434 }
 0xd03   :  { %815 = vrot.lane.b32.xlu1 %v1435_v24, %s1617_s11 }
 0xd65   :  { %v562_v25 = vpop.permute.xlu0 %561 }
 0xd66   :  { %v1822_v21 = vmul.f32 %v562_v25, %v542_v59 }
 0xd68   :  { %v570_v61 = vrot.slane %v1822_v21, 2 }
 0xd6a   :  { %571 = vrot.lane.b32.xlu2 %v570_v61, %s1618_s3 }
 0xd75   :  { %v816_v26 = vpop.permute.xlu1 %815 }
 0xd76   :  { %v818_v27 = vmul.f32 %v816_v26, %v799_v13 }
 0xd78   :  { %820 = vrot.lane.b32.xlu0 %v818_v27, %s1618_s3 }
 0xdc4   :  { %v572_v30 = vpop.permute.xlu2 %571 }
 0xdc5   :  { %1346 = vmatmul.msk.f32.vlgmr.msrb.gmra.mxu0 %vm138_vm7, %v572_v30 }
 0xdc6   :  { %1046 = vmatpush.msrb.mxu0 %v1756_v29 }
 0xdc8   :  { %1047 = vmatpush.msrb.mxu0 %v1759_v28 }
 0xdca   :  { %1048 = vmatpush.msrb.mxu0 %v1764_v31 }
 0xdcc   :  { %1049 = vmatpush.msrb.mxu0 %v1777_v33 }
 0xdea   :  { %v821_v32 = vpop.permute.xlu0 %820 }
 0xdeb   :  { %1353 = vmatmul.msk.f32.vlgmr.msra.gmra.mxu0 %vm138_vm7, %v821_v32 }
 0xe42   :  { %v592_v34 = vpop.f32.mrf.mxu0 }
 0xe43   :  { %v596_v35 = vrot.slane %v592_v34, 4 }
 0xe45   :  { %v598_v36 = vadd.f32 %v596_v35, %v1733_v60 }
 0xe47   :  { %1436 = vtanh.f32 %v598_v36  ;;  %v1347_v42 = vmul.f32 -1.442695, %v598_v36 }
 0xe4d   :  { %v1437_v37 = vpop.eup %1436 }
 0xe4e   :  { %624 = vrot.lane.b32.xlu1 %v1437_v37, %s1617_s11 }
 0xe68   :  { %v841_v38 = vpop.f32.mrf.mxu0 }
 0xe69   :  { %v845_v39 = vrot.slane %v841_v38, 6 }
 0xe6b   :  { %v847_v40 = vadd.f32 %v845_v39, %v1807_v43 }
 0xe6d   :  { %1438 = vtanh.f32 %v847_v40  ;;  %v1354_v45 = vmul.f32 -1.442695, %v847_v40 }
 0xe6e   :  { %1440 = vpow2.f32 %v1347_v42 }
 0xe73   :  { %v1439_v41 = vpop.eup %1438 }
 0xe74   :  { %873 = vrot.lane.b32.xlu2 %v1439_v41, %s1617_s11  ;;  %v1441_v44 = vpop.eup %1440 }
 0xe75   :  { %v602_v10 = vadd.f32 1.0, %v1441_v44 }
 0xe77   :  { %1442 = vrcp.f32 %v602_v10  ;;  %v614_v54 = vand.u32 2147483648, %v602_v10  ;;  %vm608_vm5 = vweird.f32 %v602_v10  ;;  %v612_v55 = vand.u32 2147483647, %v602_v10 }
 0xe78   :  { %1444 = vpow2.f32 %v1354_v45 }
 0xe79   :  { %v615_v58 = vor.u32 1.1754944e-38, %v614_v54  ;;  %vm613_vm9 = vcmp.eq.f32.partialorder %v612_v55, 8.507059e+37 }
 0xe7d   :  { %v1443_v46 = vpop.eup %1442 }
 0xe7e   :  { %v1445_v47 = vpop.eup %1444  ;;  %v604_v48 = vmul.f32 %v1443_v46, %v602_v10  ;;  %vm609_vm1 = vweird.f32 %v1443_v46 }
 0xe7f   :  { %v851_v49 = vadd.f32 1.0, %v1445_v47  ;;  %vm610_vm8 = vmor %vm608_vm5, %vm609_vm1 }
 0xe80   :  { %v605_v50 = vsub.f32 1.0, %v604_v48 }
 0xe81   :  { %1446 = vrcp.f32 %v851_v49  ;;  %v863_v3 = vand.u32 2147483648, %v851_v49  ;;  %vm857_vm13 = vweird.f32 %v851_v49  ;;  %v861_v4 = vand.u32 2147483647, %v851_v49 }
 0xe82   :  { %v606_v51 = vmul.f32 %v1443_v46, %v605_v50 }
 0xe83   :  { %v864_v6 = vor.u32 1.1754944e-38, %v863_v3  ;;  %vm862_vm15 = vcmp.eq.f32.partialorder %v861_v4, 8.507059e+37 }
 0xe84   :  { %v607_v53 = vadd.f32 %v1443_v46, %v606_v51 }
 0xe86   :  { %v611_v57 = vsel %vm610_vm8, %v1443_v46, %v607_v53 }
 0xe87   :  { %v1447_v52 = vpop.eup %1446  ;;  %v616_v62 = vsel %vm613_vm9, %v615_v58, %v611_v57 }
 0xe88   :  { %v853_v56 = vmul.f32 %v1447_v52, %v851_v49  ;;  %vm858_vm6 = vweird.f32 %v1447_v52  ;;  %v622_v13 = vmul.f32 %v620_v12, %v616_v62 }
 0xe89   :  { %vm859_vm14 = vmor %vm857_vm13, %vm858_vm6 }
 0xe8a   :  { %v854_v59 = vsub.f32 1.0, %v853_v56 }
 0xe8c   :  { %v855_v1 = vmul.f32 %v1447_v52, %v854_v59 }
 0xe8e   :  { %v856_v2 = vadd.f32 %v1447_v52, %v855_v1 }
 0xe90   :  { %v860_v5 = vsel %vm859_vm14, %v1447_v52, %v856_v2 }
 0xe91   :  { %v865_v11 = vsel %vm862_vm15, %v864_v6, %v860_v5 }
 0xe92   :  { %v871_v19 = vmul.f32 %v869_v17, %v865_v11 }
 0xec0   :  { %v625_v63 = vpop.permute.xlu1 %624 }
 0xec1   :  { %v627_v0 = vmul.f32 %v625_v63, %v616_v62 }
 0xec3   :  { %629 = vrot.lane.b32.xlu0 %v627_v0, %s1617_s11 }
 0xece   :  { %v874_v9 = vpop.permute.xlu2 %873 }
 0xecf   :  { %v876_v8 = vmul.f32 %v874_v9, %v865_v11 }
 0xed1   :  { %878 = vrot.lane.b32.xlu1 %v876_v8, %s1617_s11 }
 0xf35   :  { %v630_v14 = vpop.permute.xlu0 %629 }
 0xf36   :  { %v1840_v15 = vadd.f32 %v630_v14, %v622_v13 }
 0xf38   :  { %1448 = vtanh.f32 %v1840_v15 }
 0xf3e   :  { %v1449_v16 = vpop.eup %1448 }
 0xf3f   :  { %635 = vrot.lane.b32.xlu2 %v1449_v16, %s1617_s11 }
 0xf43   :  { %v879_v20 = vpop.permute.xlu1 %878 }
 0xf44   :  { %v881_v22 = vadd.f32 %v879_v20, %v871_v19 }
 0xf46   :  { %1450 = vtanh.f32 %v881_v22  ;;  %v939_v53 = vrot.slane %v881_v22, 6  ;;  %v694_v22 = vrot.slane %v1840_v15, 6 }
 0xf4c   :  { %v1451_v24 = vpop.eup %1450 }
 0xf4d   :  { %884 = vrot.lane.b32.xlu0 %v1451_v24, %s1617_s11 }
 0xf99   :  { %v636_v25 = vpop.permute.xlu2 %635 }
 0xf9a   :  { %v1846_v18 = vmul.f32 %v636_v25, %v616_v62 }
 0xf9c   :  { %v644_v61 = vrot.slane %v1846_v18, 4 }
 0xf9e   :  { %645 = vrot.lane.b32.xlu1 %v644_v61, %s1618_s3 }
 0xfbf   :  { %v885_v26 = vpop.permute.xlu0 %884 }
 0xfc0   :  { %v887_v27 = vmul.f32 %v885_v26, %v865_v11 }
 0xfc2   :  { %v889_v30 = vrot.slane %v887_v27, 2 }
 0xfc4   :  { %890 = vrot.lane.b32.xlu2 %v889_v30, %s1618_s3 }
0x1010   :  { %v646_v23 = vpop.permute.xlu1 %645 }
0x1011   :  { %1348 = vmatmul.msk.f32.vlgmr.msra.gmra.mxu1 %vm138_vm7, %v646_v23 }
0x1012   :  { %1112 = vmatpush.msra.mxu1 %v1756_v29 }
0x1014   :  { %1113 = vmatpush.msra.mxu1 %v1759_v28 }
0x1016   :  { %1114 = vmatpush.msra.mxu1 %v1764_v31 }
0x1018   :  { %1115 = vmatpush.msra.mxu1 %v1777_v33 }
0x101e   :  { %v891_v32 = vpop.permute.xlu2 %890 }
0x101f   :  { %1355 = vmatmul.msk.f32.vlgmr.msrb.gmra.mxu1 %vm138_vm7, %v891_v32 }
0x108e   :  { %v666_v34 = vpop.f32.mrf.mxu1 }
0x108f   :  { %v670_v45 = vrot.slane %v666_v34, 2 }
0x1091   :  { %v672_v48 = vadd.f32 %v670_v45, %v1733_v60 }
0x1093   :  { %v1349_v60 = vmul.f32 -1.442695, %v672_v48 }
0x109c   :  { %v911_v35 = vpop.f32.mrf.mxu1 }
0x109d   :  { %v915_v36 = vrot.slane %v911_v35, 4 }
0x109f   :  { %v917_v37 = vadd.f32 %v915_v36, %v1807_v43 }
0x10a1   :  { %1452 = vtanh.f32 %v917_v37  ;;  %v1356_v39 = vmul.f32 -1.442695, %v917_v37 }
0x10a3   :  { %1454 = vpow2.f32 %v1356_v39 }
0x10a7   :  { %v1453_v38 = vpop.eup %1452 }
0x10a8   :  { %943 = vrot.lane.b32.xlu0 %v1453_v38, %s1617_s11 }
0x10a9   :  { %v1455_v29 = vpop.eup %1454 }
0x10aa   :  { %v921_v28 = vadd.f32 1.0, %v1455_v29 }
0x10ac   :  { %1456 = vrcp.f32 %v921_v28  ;;  %v933_v44 = vand.u32 2147483648, %v921_v28  ;;  %vm927_vm2 = vweird.f32 %v921_v28  ;;  %v931_v10 = vand.u32 2147483647, %v921_v28 }
0x10ad   :  { %1458 = vtanh.f32 %v672_v48 }
0x10ae   :  { %v934_v47 = vor.u32 1.1754944e-38, %v933_v44  ;;  %vm932_vm4 = vcmp.eq.f32.partialorder %v931_v10, 8.507059e+37 }
0x10b2   :  { %v1457_v31 = vpop.eup %1456 }
0x10b3   :  { %v923_v40 = vmul.f32 %v1457_v31, %v921_v28  ;;  %vm928_vm0 = vweird.f32 %v1457_v31  ;;  %v1459_v52 = vpop.eup %1458 }
0x10b4   :  { %vm929_vm3 = vmor %vm927_vm2, %vm928_vm0 }
0x10b5   :  { %v924_v33 = vsub.f32 1.0, %v923_v40 }
0x10b7   :  { %v925_v41 = vmul.f32 %v1457_v31, %v924_v33 }
0x10b9   :  { %v926_v42 = vadd.f32 %v1457_v31, %v925_v41 }
0x10bb   :  { %v930_v46 = vsel %vm929_vm3, %v1457_v31, %v926_v42 }
0x10bc   :  { %v935_v50 = vsel %vm932_vm4, %v934_v47, %v930_v46 }
0x10bd   :  { %v941_v54 = vmul.f32 %v939_v53, %v935_v50 }
0x111a   :  { %v944_v49 = vpop.permute.xlu0 %943 }
0x111b   :  { %v946_v51 = vmul.f32 %v944_v49, %v935_v50 }
0x111d   :  { %948 = vrot.lane.b32.xlu1 %v946_v51, %s1617_s11 }
0x1125   :  { %698 = vrot.lane.b32.xlu1 %v1459_v52, %s1617_s11 }
0x118f   :  { %v949_v55 = vpop.permute.xlu1 %948 }
0x1190   :  { %v1862_v56 = vadd.f32 %v949_v55, %v941_v54 }
0x1192   :  { %1460 = vtanh.f32 %v1862_v56  ;;  %v1009_v41 = vrot.slane %v1862_v56, 6 }
0x1193   :  { %1462 = vpow2.f32 %v1349_v60 }
0x1197   :  { %v699_v8 = vpop.permute.xlu1 %698 }
0x1198   :  { %v1461_v57 = vpop.eup %1460 }
0x1199   :  { %954 = vrot.lane.b32.xlu2 %v1461_v57, %s1617_s11  ;;  %v1463_v58 = vpop.eup %1462 }
0x119a   :  { %v676_v59 = vadd.f32 1.0, %v1463_v58 }
0x119c   :  { %1464 = vrcp.f32 %v676_v59  ;;  %v688_v6 = vand.u32 2147483648, %v676_v59  ;;  %vm682_vm5 = vweird.f32 %v676_v59  ;;  %v686_v9 = vand.u32 2147483647, %v676_v59 }
0x119e   :  { %v689_v12 = vor.u32 1.1754944e-38, %v688_v6  ;;  %vm687_vm9 = vcmp.eq.f32.partialorder %v686_v9, 8.507059e+37 }
0x11a2   :  { %v1465_v62 = vpop.eup %1464 }
0x11a3   :  { %v678_v63 = vmul.f32 %v1465_v62, %v676_v59  ;;  %vm683_vm1 = vweird.f32 %v1465_v62 }
0x11a4   :  { %vm684_vm8 = vmor %vm682_vm5, %vm683_vm1 }
0x11a5   :  { %v679_v0 = vsub.f32 1.0, %v678_v63 }
0x11a7   :  { %v680_v1 = vmul.f32 %v1465_v62, %v679_v0 }
0x11a9   :  { %v681_v4 = vadd.f32 %v1465_v62, %v680_v1 }
0x11ab   :  { %v685_v11 = vsel %vm684_vm8, %v1465_v62, %v681_v4 }
0x11ac   :  { %v690_v13 = vsel %vm687_vm9, %v689_v12, %v685_v11 }
0x11ad   :  { %v701_v14 = vmul.f32 %v699_v8, %v690_v13  ;;  %v696_v25 = vmul.f32 %v694_v22, %v690_v13 }
0x11f3   :  { %v955_v2 = vpop.permute.xlu2 %954 }
0x11f4   :  { %v957_v3 = vmul.f32 %v955_v2, %v935_v50 }
0x11f6   :  { %v959_v5 = vrot.slane %v957_v3, 4 }
0x11f8   :  { %960 = vrot.lane.b32.xlu0 %v959_v5, %s1618_s3 }
0x1200   :  { %703 = vrot.lane.b32.xlu0 %v701_v14, %s1617_s11 }
0x126a   :  { %v961_v16 = vpop.permute.xlu0 %960 }
0x126b   :  { %1357 = vmatmul.msk.f32.vlgmr.msrb.gmra.mxu3 %vm138_vm7, %v961_v16 }
0x1272   :  { %v704_v24 = vpop.permute.xlu0 %703 }
0x1273   :  { %v706_v61 = vadd.f32 %v704_v24, %v696_v25 }
0x12ee   :  { %v981_v17 = vpop.f32.mrf.mxu3 }
0x12ef   :  { %v985_v19 = vrot.slane %v981_v17, 2 }
0x12f1   :  { %v987_v20 = vadd.f32 %v985_v19, %v1807_v43 }
0x12f3   :  { %1466 = vtanh.f32 %v987_v20  ;;  %v1358_v30 = vmul.f32 -1.442695, %v987_v20 }
0x12f4   :  { %1468 = vtanh.f32 %v706_v61 }
0x12f5   :  { %1470 = vpow2.f32 %v1358_v30 }
0x12f9   :  { %v1467_v26 = vpop.eup %1466 }
0x12fa   :  { %1013 = vrot.lane.b32.xlu2 %v1467_v26, %s1617_s11  ;;  %v1469_v27 = vpop.eup %1468 }
0x12fb   :  { %v1471_v23 = vpop.eup %1470 }
0x12fc   :  { %v991_v43 = vadd.f32 1.0, %v1471_v23 }
0x12fe   :  { %1472 = vrcp.f32 %v991_v43  ;;  %v1003_v37 = vand.u32 2147483648, %v991_v43  ;;  %vm997_vm13 = vweird.f32 %v991_v43  ;;  %v1001_v38 = vand.u32 2147483647, %v991_v43 }
0x1300   :  { %v1004_v29 = vor.u32 1.1754944e-38, %v1003_v37  ;;  %vm1002_vm15 = vcmp.eq.f32.partialorder %v1001_v38, 8.507059e+37 }
0x1302   :  { %709 = vrot.lane.b32.xlu2 %v1469_v27, %s1617_s11 }
0x1304   :  { %v1473_v15 = vpop.eup %1472 }
0x1305   :  { %v993_v32 = vmul.f32 %v1473_v15, %v991_v43  ;;  %vm998_vm6 = vweird.f32 %v1473_v15 }
0x1306   :  { %vm999_vm14 = vmor %vm997_vm13, %vm998_vm6 }
0x1307   :  { %v994_v34 = vsub.f32 1.0, %v993_v32 }
0x1309   :  { %v995_v35 = vmul.f32 %v1473_v15, %v994_v34 }
0x130a   :  { %640 = vrot.lane.b32.xlu2 %v1846_v18, %s1618_s3 }
0x130b   :  { %v996_v36 = vadd.f32 %v1473_v15, %v995_v35 }
0x130d   :  { %v1000_v39 = vsel %vm999_vm14, %v1473_v15, %v996_v36 }
0x130e   :  { %v1005_v18 = vsel %vm1002_vm15, %v1004_v29, %v1000_v39 }
0x130f   :  { %v1011_v42 = vmul.f32 %v1009_v41, %v1005_v18 }
0x1354   :  { %v1014_v28 = vpop.permute.xlu2 %1013 }
0x1355   :  { %v1016_v31 = vmul.f32 %v1014_v28, %v1005_v18 }
0x1357   :  { %1018 = vrot.lane.b32.xlu1 %v1016_v31, %s1617_s11 }
0x135c   :  { %v710_v40 = vpop.permute.xlu2 %709 }
0x135d   :  { %v712_v47 = vmul.f32 %v710_v40, %v690_v13 }
0x135f   :  { %566 = vrot.lane.b32.xlu1 %v1822_v21, %s1618_s3 }
0x1364   :  { %v641_v33 = vpop.permute.xlu2 %640 }
0x1365   :  { %643 = vst.msk [vmem:[#allocation2 + $0x8] sm:$0x30] %vm351_vm11, %v641_v33 }
0x13c9   :  { %v1019_v44 = vpop.permute.xlu1 %1018 }
0x13ca   :  { %v1021_v10 = vadd.f32 %v1019_v44, %v1011_v42 }
0x13cc   :  { %1474 = vtanh.f32 %v1021_v10  ;;  %v1076_v8 = vrot.slane %v1021_v10, 6 }
0x13d1   :  { %v567_v45 = vpop.permute.xlu1 %566 }
0x13d2   :  { %v1475_v46 = vpop.eup %1474  ;;  %569 = vst.msk [vmem:[#allocation2 + $0x8] sm:$0xc] %vm276_vm10, %v567_v45 }
0x13d3   :  { %1024 = vrot.lane.b32.xlu0 %v1475_v46, %s1617_s11 }
0x13db   :  { %714 = vrot.lane.b32.xlu0 %v712_v47, %s1618_s3 }
0x1445   :  { %v1025_v48 = vpop.permute.xlu0 %1024 }
0x1446   :  { %v1027_v21 = vmul.f32 %v1025_v48, %v1005_v18 }
0x1448   :  { %v1029_v49 = vrot.slane %v1027_v21, 6 }
0x144a   :  { %1030 = vrot.lane.b32.xlu1 %v1029_v49, %s1618_s3 }
0x144d   :  { %v715_v50 = vpop.permute.xlu0 %714 }
0x144e   :  { %717 = vst.msk [vmem:[#allocation2 + $0x8] sm:$0xc0] %vm426_vm12, %v715_v50 }
0x1455   :  { %v719_v51 = vld [vmem:[#allocation2 + $0x8] sm:$0xff] }
0x1456   :  { %1351 = vmatmul.msk.f32.gmra.mxu2 %vm138_vm7, %v719_v51 }
0x14bc   :  { %v1031_v52 = vpop.permute.xlu1 %1030 }
0x14bd   :  { %1359 = vmatmul.msk.f32.vlgmr.msrb.gmra.mxu0 %vm138_vm7, %v1031_v52 }
0x14d9   :  { %v754_v53 = vpop.f32.mrf.mxu2 }
0x14da   :  { %v1888_v54 = vadd.f32 %v1804_v7, %v754_v53 }
0x153a   :  { %v1051_v55 = vpop.f32.mrf.mxu0 }
0x153b   :  { %v1054_v56 = vadd.f32 %v1051_v55, %v1888_v54 }
0x153d   :  { %1476 = vtanh.f32 %v1054_v56  ;;  %v1360_v60 = vmul.f32 -1.442695, %v1054_v56 }
0x153f   :  { %1478 = vpow2.f32 %v1360_v60 }
0x1543   :  { %v1477_v57 = vpop.eup %1476 }
0x1544   :  { %1080 = vrot.lane.b32.xlu2 %v1477_v57, %s1617_s11 }
0x1545   :  { %v1479_v58 = vpop.eup %1478 }
0x1546   :  { %v1058_v59 = vadd.f32 1.0, %v1479_v58 }
0x1548   :  { %1480 = vrcp.f32 %v1058_v59  ;;  %v1070_v7 = vand.u32 2147483648, %v1058_v59  ;;  %vm1064_vm11 = vweird.f32 %v1058_v59  ;;  %v1068_v3 = vand.u32 2147483647, %v1058_v59 }
0x154a   :  { %v1071_v5 = vor.u32 1.1754944e-38, %v1070_v7  ;;  %vm1069_vm2 = vcmp.eq.f32.partialorder %v1068_v3, 8.507059e+37 }
0x154e   :  { %v1481_v62 = vpop.eup %1480 }
0x154f   :  { %v1060_v63 = vmul.f32 %v1481_v62, %v1058_v59  ;;  %vm1065_vm10 = vweird.f32 %v1481_v62 }
0x1550   :  { %vm1066_vm0 = vmor %vm1064_vm11, %vm1065_vm10  ;;  %vm1323_vm11 = vcmask 7174  }
0x1551   :  { %v1061_v0 = vsub.f32 1.0, %v1060_v63 }
0x1553   :  { %v1062_v1 = vmul.f32 %v1481_v62, %v1061_v0 }
0x1555   :  { %v1063_v2 = vadd.f32 %v1481_v62, %v1062_v1 }
0x1557   :  { %v1067_v4 = vsel %vm1066_vm0, %v1481_v62, %v1063_v2 }
0x1558   :  { %v1072_v9 = vsel %vm1069_vm2, %v1071_v5, %v1067_v4 }
0x1559   :  { %v1078_v12 = vmul.f32 %v1076_v8, %v1072_v9 }
0x159e   :  { %v1081_v6 = vpop.permute.xlu2 %1080 }
0x159f   :  { %v1083_v11 = vmul.f32 %v1081_v6, %v1072_v9 }
0x15a1   :  { %1085 = vrot.lane.b32.xlu0 %v1083_v11, %s1617_s11 }
0x1613   :  { %v1086_v13 = vpop.permute.xlu0 %1085 }
0x1614   :  { %v1088_v14 = vadd.f32 %v1086_v13, %v1078_v12 }
0x1616   :  { %1482 = vtanh.f32 %v1088_v14  ;;  %v1145_v18 = vrot.slane %v1088_v14, 6 }
0x161c   :  { %v1483_v16 = vpop.eup %1482 }
0x161d   :  { %1091 = vrot.lane.b32.xlu1 %v1483_v16, %s1617_s11 }
0x168f   :  { %v1092_v17 = vpop.permute.xlu1 %1091 }
0x1690   :  { %v1094_v19 = vmul.f32 %v1092_v17, %v1072_v9 }
0x1692   :  { %1096 = vrot.lane.b32.xlu2 %v1094_v19, %s1618_s3 }
0x16ec   :  { %v1097_v20 = vpop.permute.xlu2 %1096 }
0x16ed   :  { %1361 = vmatmul.msk.f32.vlgmr.msra.gmra.mxu1 %vm138_vm7, %v1097_v20 }
0x176a   :  { %v1117_v22 = vpop.f32.mrf.mxu1 }
0x176b   :  { %v1121_v24 = vrot.slane %v1117_v22, 6 }
0x176d   :  { %v1123_v25 = vadd.f32 %v1121_v24, %v1888_v54 }
0x176f   :  { %1484 = vtanh.f32 %v1123_v25  ;;  %v1362_v26 = vmul.f32 -1.442695, %v1123_v25 }
0x1771   :  { %1486 = vpow2.f32 %v1362_v26 }
0x1775   :  { %v1485_v61 = vpop.eup %1484 }
0x1776   :  { %1149 = vrot.lane.b32.xlu0 %v1485_v61, %s1617_s11 }
0x1777   :  { %v1487_v27 = vpop.eup %1486 }
0x1778   :  { %v1127_v30 = vadd.f32 1.0, %v1487_v27 }
0x177a   :  { %1488 = vrcp.f32 %v1127_v30  ;;  %v1139_v35 = vand.u32 2147483648, %v1127_v30  ;;  %vm1133_vm4 = vweird.f32 %v1127_v30  ;;  %v1137_v36 = vand.u32 2147483647, %v1127_v30 }
0x177c   :  { %v1140_v38 = vor.u32 1.1754944e-38, %v1139_v35  ;;  %vm1138_vm5 = vcmp.eq.f32.partialorder %v1137_v36, 8.507059e+37 }
0x1780   :  { %v1489_v23 = vpop.eup %1488 }
0x1781   :  { %v1129_v43 = vmul.f32 %v1489_v23, %v1127_v30  ;;  %vm1134_vm3 = vweird.f32 %v1489_v23 }
0x1782   :  { %vm1135_vm1 = vmor %vm1133_vm4, %vm1134_vm3 }
0x1783   :  { %v1130_v15 = vsub.f32 1.0, %v1129_v43 }
0x1785   :  { %v1131_v32 = vmul.f32 %v1489_v23, %v1130_v15 }
0x1787   :  { %v1132_v34 = vadd.f32 %v1489_v23, %v1131_v32 }
0x1789   :  { %v1136_v37 = vsel %vm1135_vm1, %v1489_v23, %v1132_v34  ;;  %v1378_v34 = vld [vmem:[#allocation9] ss:$0 sm:$0xff] }
0x178a   :  { %v1141_v29 = vsel %vm1138_vm5, %v1140_v38, %v1136_v37 }
0x178b   :  { %v1147_v31 = vmul.f32 %v1145_v18, %v1141_v29 }
0x17e8   :  { %v1150_v39 = vpop.permute.xlu0 %1149 }
0x17e9   :  { %v1152_v28 = vmul.f32 %v1150_v39, %v1141_v29 }
0x17eb   :  { %1154 = vrot.lane.b32.xlu1 %v1152_v28, %s1617_s11 }
0x185d   :  { %v1155_v40 = vpop.permute.xlu1 %1154 }
0x185e   :  { %v1157_v33 = vadd.f32 %v1155_v40, %v1147_v31 }
0x1860   :  { %1490 = vtanh.f32 %v1157_v33  ;;  %v1215_v2 = vrot.slane %v1157_v33, 6 }
0x1866   :  { %v1491_v41 = vpop.eup %1490 }
0x1867   :  { %1160 = vrot.lane.b32.xlu2 %v1491_v41, %s1617_s11  ;;  %v1379_v41 = vld [vmem:[#allocation3] ss:$0 sm:$0xff] }
0x18c1   :  { %v1161_v42 = vpop.permute.xlu2 %1160 }
0x18c2   :  { %v1163_v44 = vmul.f32 %v1161_v42, %v1141_v29 }
0x18c4   :  { %v1165_v10 = vrot.slane %v1163_v44, 2 }
0x18c6   :  { %1166 = vrot.lane.b32.xlu0 %v1165_v10, %s1618_s3 }
0x1938   :  { %v1167_v45 = vpop.permute.xlu0 %1166 }
0x1939   :  { %1363 = vmatmul.msk.f32.vlgmr.msrb.gmra.mxu2 %vm138_vm7, %v1167_v45 }
0x19bc   :  { %v1187_v46 = vpop.f32.mrf.mxu2 }
0x19bd   :  { %v1191_v47 = vrot.slane %v1187_v46, 4 }
0x19bf   :  { %v1193_v48 = vadd.f32 %v1191_v47, %v1888_v54 }
0x19c1   :  { %1492 = vtanh.f32 %v1193_v48  ;;  %v1364_v49 = vmul.f32 -1.442695, %v1193_v48 }
0x19c3   :  { %1494 = vpow2.f32 %v1364_v49 }
0x19c7   :  { %v1493_v21 = vpop.eup %1492 }
0x19c8   :  { %1219 = vrot.lane.b32.xlu1 %v1493_v21, %s1617_s11 }
0x19c9   :  { %v1495_v50 = vpop.eup %1494 }
0x19ca   :  { %v1197_v51 = vadd.f32 1.0, %v1495_v50 }
0x19cc   :  { %1496 = vrcp.f32 %v1197_v51  ;;  %v1209_v60 = vand.u32 2147483648, %v1197_v51  ;;  %vm1203_vm9 = vweird.f32 %v1197_v51  ;;  %v1207_v58 = vand.u32 2147483647, %v1197_v51 }
0x19ce   :  { %v1210_v62 = vor.u32 1.1754944e-38, %v1209_v60  ;;  %vm1208_vm13 = vcmp.eq.f32.partialorder %v1207_v58, 8.507059e+37 }
0x19d2   :  { %v1497_v52 = vpop.eup %1496 }
0x19d3   :  { %v1199_v53 = vmul.f32 %v1497_v52, %v1197_v51  ;;  %vm1204_vm8 = vweird.f32 %v1497_v52 }
0x19d4   :  { %vm1205_vm6 = vmor %vm1203_vm9, %vm1204_vm8 }
0x19d5   :  { %v1200_v55 = vsub.f32 1.0, %v1199_v53 }
0x19d7   :  { %v1201_v56 = vmul.f32 %v1497_v52, %v1200_v55 }
0x19d9   :  { %v1202_v57 = vadd.f32 %v1497_v52, %v1201_v56 }
0x19db   :  { %v1206_v59 = vsel %vm1205_vm6, %v1497_v52, %v1202_v57 }
0x19dc   :  { %v1211_v0 = vsel %vm1208_vm13, %v1210_v62, %v1206_v59 }
0x19dd   :  { %v1217_v7 = vmul.f32 %v1215_v2, %v1211_v0 }
0x1a3a   :  { %v1220_v63 = vpop.permute.xlu1 %1219 }
0x1a3b   :  { %v1222_v1 = vmul.f32 %v1220_v63, %v1211_v0 }
0x1a3d   :  { %1224 = vrot.lane.b32.xlu2 %v1222_v1, %s1617_s11 }
0x1a97   :  { %v1225_v3 = vpop.permute.xlu2 %1224 }
0x1a98   :  { %v1227_v4 = vadd.f32 %v1225_v3, %v1217_v7 }
0x1a9a   :  { %1498 = vtanh.f32 %v1227_v4  ;;  %v1285_v35 = vrot.slane %v1227_v4, 6 }
0x1aa0   :  { %v1499_v5 = vpop.eup %1498 }
0x1aa1   :  { %1230 = vrot.lane.b32.xlu0 %v1499_v5, %s1617_s11 }
0x1b13   :  { %v1231_v6 = vpop.permute.xlu0 %1230 }
0x1b14   :  { %v1233_v9 = vmul.f32 %v1231_v6, %v1211_v0 }
0x1b16   :  { %v1235_v11 = vrot.slane %v1233_v9, 4 }
0x1b18   :  { %1236 = vrot.lane.b32.xlu1 %v1235_v11, %s1618_s3 }
0x1b8a   :  { %v1237_v8 = vpop.permute.xlu1 %1236 }
0x1b8b   :  { %1365 = vmatmul.msk.f32.vlgmr.msra.gmra.mxu3 %vm138_vm7, %v1237_v8 }
0x1c0e   :  { %v1257_v12 = vpop.f32.mrf.mxu3 }
0x1c0f   :  { %v1261_v13 = vrot.slane %v1257_v12, 2 }
0x1c11   :  { %v1263_v14 = vadd.f32 %v1261_v13, %v1888_v54 }
0x1c13   :  { %1500 = vtanh.f32 %v1263_v14  ;;  %v1366_v17 = vmul.f32 -1.442695, %v1263_v14 }
0x1c15   :  { %1502 = vpow2.f32 %v1366_v17 }
0x1c19   :  { %v1501_v16 = vpop.eup %1500 }
0x1c1a   :  { %1289 = vrot.lane.b32.xlu2 %v1501_v16, %s1617_s11 }
0x1c1b   :  { %v1503_v19 = vpop.eup %1502 }
0x1c1c   :  { %v1267_v20 = vadd.f32 1.0, %v1503_v19 }
0x1c1e   :  { %1504 = vrcp.f32 %v1267_v20  ;;  %v1279_v27 = vand.u32 2147483648, %v1267_v20  ;;  %vm1273_vm7 = vweird.f32 %v1267_v20  ;;  %v1277_v30 = vand.u32 2147483647, %v1267_v20 }
0x1c20   :  { %v1280_v23 = vor.u32 1.1754944e-38, %v1279_v27  ;;  %vm1278_vm10 = vcmp.eq.f32.partialorder %v1277_v30, 8.507059e+37 }
0x1c22   :  { %1307 = vrot.lane.b32.xlu2 %v1378_v34, %s1618_s3 }
0x1c24   :  { %v1505_v22 = vpop.eup %1504 }
0x1c25   :  { %v1269_v24 = vmul.f32 %v1505_v22, %v1267_v20  ;;  %vm1274_vm14 = vweird.f32 %v1505_v22 }
0x1c26   :  { %vm1275_vm15 = vmor %vm1273_vm7, %vm1274_vm14 }
0x1c27   :  { %v1270_v25 = vsub.f32 1.0, %v1269_v24 }
0x1c29   :  { %v1271_v61 = vmul.f32 %v1505_v22, %v1270_v25 }
0x1c2b   :  { %v1272_v26 = vadd.f32 %v1505_v22, %v1271_v61 }
0x1c2d   :  { %v1276_v54 = vsel %vm1275_vm15, %v1505_v22, %v1272_v26 }
0x1c2e   :  { %v1281_v15 = vsel %vm1278_vm10, %v1280_v23, %v1276_v54 }
0x1c2f   :  { %v1287_v36 = vmul.f32 %v1285_v35, %v1281_v15 }
0x1c74   :  { %v1290_v43 = vpop.permute.xlu2 %1289 }
0x1c75   :  { %v1292_v32 = vmul.f32 %v1290_v43, %v1281_v15 }
0x1c77   :  { %1294 = vrot.lane.b32.xlu0 %v1292_v32, %s1617_s11 }
0x1c7c   :  { %v1308_v28 = vpop.permute.xlu2 %1307 }
0x1ce9   :  { %v1295_v37 = vpop.permute.xlu0 %1294 }
0x1cea   :  { %v1297_v38 = vadd.f32 %v1295_v37, %v1287_v36 }
0x1cec   :  { %1506 = vtanh.f32 %v1297_v38 }
0x1cf2   :  { %v1507_v39 = vpop.eup %1506 }
0x1cf3   :  { %1300 = vrot.lane.b32.xlu1 %v1507_v39, %s1617_s11 }
0x1d65   :  { %v1301_v29 = vpop.permute.xlu1 %1300 }
0x1d66   :  { %v1303_v18 = vmul.f32 %v1301_v29, %v1281_v15 }
0x1d68   :  { %v1310_v31 = vmul.f32 %v1308_v28, %v1303_v18 }
0x1d6a   :  { %1312 = vrot.lane.b32.xlu0 %v1310_v31, %s1618_s3 }
0x1ddc   :  { %v1313_v40 = vpop.permute.xlu0 %1312 }
0x1ddd   :  { %v1315_v33 = vsel %vm426_vm12, %v1313_v40, 0.0 }
0x1dde   :  { %1316 = vadd.xlane.f32.xlu1 %v1315_v33 }
0x1e51   :  { %v1317_v42 = vpop.xlane.xlu1 %1316 }
0x1e52   :  { %v1322_v44 = vadd.f32 %v1379_v41, %v1317_v42 }
0x1e54   :  { %1324 = vst.msk [vmem:[%s1927_s9 - $0x6] sm:$0xc0] %vm1323_vm11, %v1322_v44 }
0x1e55   :  { %1329 = vsyncpa [#allocation5], 1 }
0x1e56   :  { %1330 = vsyncpa [#allocation7], 1 }
0x1e57   :  { %1331 = vsyncpa [#allocation10], 1 }

</bundles_post_ra>
